<compile_context>
chip_gen: v6e
topology: v6e:2x2x1
jax: 0.10.0
libtpu: 0.0.40
codegen_flags: <defaults>
</compile_context>

<pallas_src>
import functools

import jax
import jax.numpy as jnp
from jax.experimental import pallas as pl
from jax.experimental.pallas import tpu as pltpu


def _rsbu_cw_kernel(x_ref, bn1s_ref, bn1b_ref, w1_ref, b1_ref,
                    bn2s_ref, bn2b_ref, w2_ref, b2_ref,
                    fc1w_ref, fc1b_ref, fcbns_ref, fcbnb_ref,
                    fc2w_ref, fc2b_ref, o_ref,
                    xt_ref, hp_ref, hq_ref,
                    *, B, L, Lc1, C, Cin, K, stride, pad, down_sample):
    f32 = jnp.float32

    # Zero only the halo rows / padded channel columns.  Done every grid step
    # (not just step 0) so the kernel is correct when the "parallel" batch
    # axis is split across TensorCores (each core owns its own scratch).
    if Cin < C:
        xt_ref[:, pl.ds(Cin, C - Cin)] = jnp.zeros((L, C - Cin), f32)
    hp_ref[pl.ds(0, pad), :] = jnp.zeros((pad, C), f32)
    hp_ref[pl.ds(L + pad, pad), :] = jnp.zeros((pad, C), f32)
    hq_ref[pl.ds(0, pad), :] = jnp.zeros((pad, C), f32)
    hq_ref[pl.ds(Lc1 + pad, pad), :] = jnp.zeros((pad, C), f32)

    inv_len = 1.0 / Lc1

    for b in range(B):                       # static unroll over the batch tile
        # --- NCL -> channels-last (L, C) slab (in-kernel XLU transpose); the
        #     residual's channel pad lives in the zeroed scratch columns. ----
        xb = x_ref[b]                        # (Cin, L)
        if Cin < C:
            xt_ref[:, pl.ds(0, Cin)] = xb.T
        else:
            xt_ref[...] = xb.T
        xt = xt_ref[...]                     # (L, C), padded channels are 0

        # --- BN1 + ReLU into the zero-padded conv slab ----------------------
        hp_ref[pl.ds(pad, L), :] = jnp.maximum(
            xt * bn1s_ref[...] + bn1b_ref[...], 0.0)

        # --- Conv1d #1 (stride, padding=pad): K shifted/strided matmuls -----
        y1 = jnp.zeros((Lc1, C), f32)
        for k in range(K):
            if stride == 1:
                hk = hp_ref[pl.ds(k, Lc1), :]
            else:
                hk = hp_ref[pl.ds(k, Lc1, stride=stride), :]
            y1 = y1 + jnp.dot(hk, w1_ref[k], preferred_element_type=f32)
        y1 = y1 + b1_ref[...]

        # --- BN2 + ReLU + Conv1d #2 (stride 1, padding=pad) ------------------
        hq_ref[pl.ds(pad, Lc1), :] = jnp.maximum(
            y1 * bn2s_ref[...] + bn2b_ref[...], 0.0)
        y2 = jnp.zeros((Lc1, C), f32)
        for k in range(K):
            y2 = y2 + jnp.dot(hq_ref[pl.ds(k, Lc1), :], w2_ref[k],
                              preferred_element_type=f32)
        y2 = y2 + b2_ref[...]

        # --- channel-wise soft threshold -------------------------------------
        x_abs = jnp.abs(y2)
        gap = jnp.sum(x_abs, axis=0, keepdims=True) * inv_len          # (1, C)
        a = jnp.dot(gap, fc1w_ref[...], preferred_element_type=f32) + fc1b_ref[...]
        a = jnp.maximum(a * fcbns_ref[...] + fcbnb_ref[...], 0.0)
        z = jnp.dot(a, fc2w_ref[...], preferred_element_type=f32) + fc2b_ref[...]
        alpha = 1.0 / (1.0 + jnp.exp(-z))
        thr = gap * alpha                                              # (1, C), >= 0
        x_shr = y2 - jnp.clip(y2, -thr, thr)   # == sign(y2) * max(|y2| - thr, 0)

        # --- residual + channels-last -> NCL store (lane-dense along length) -
        if down_sample:
            res = xt_ref[pl.ds(0, Lc1, stride=2), :]   # AvgPool1d(k=1, s=2) == ::2
        else:
            res = xt                                    # Lc1 == L in this case
        o_ref[b] = (x_shr + res).T                      # (C, Lc1)


def rsbu_cw_forward(x_ncl, params, *, down_sample, kernel_size=3):
    """x_ncl: (N, C_in, L) float32, PyTorch NCL convention. Returns (N, C_out, Lc1)."""
    N, C_in, L = x_ncl.shape
    C_out = params["b1"].shape[0]
    K = kernel_size
    pad = 1
    stride = 2 if down_sample else 1
    Lc1 = (L + 2 * pad - K) // stride + 1

    res_len = ((L - 1) // 2 + 1) if down_sample else L
    if res_len != Lc1:
        raise ValueError("residual/conv length mismatch (module assumes K=3, padding=1)")
    if C_out < C_in:
        raise ValueError("out_channels must be >= in_channels (F.pad semantics)")
    C = C_out

    x_ncl = x_ncl.astype(jnp.float32)

    def pad_c(v):
        return jnp.pad(v, (0, C - C_in)) if C_in < C else v

    w1 = jnp.transpose(params["w1_oik"], (2, 1, 0))               # (K, C_in, C_out)
    if C_in < C:
        w1 = jnp.pad(w1, ((0, 0), (0, C - C_in), (0, 0)))         # zero taps for padded lanes
    w2 = jnp.transpose(params["w2_oik"], (2, 1, 0))               # (K, C_out, C_out)

    args = (
        x_ncl,
        pad_c(params["bn1_s"])[None, :], pad_c(params["bn1_b"])[None, :],
        w1, params["b1"][None, :],
        params["bn2_s"][None, :], params["bn2_b"][None, :],
        w2, params["b2"][None, :],
        params["fc1_w"].T, params["fc1_b"][None, :],
        params["fcbn_s"][None, :], params["fcbn_b"][None, :],
        params["fc2_w"].T, params["fc2_b"][None, :],
    )

    # Batch tile: largest divisor of N (<= 8) whose in+out blocks stay small.
    def blk_bytes(b):
        return 4 * b * (C_in * L + C * Lc1)

    b_blk = 1
    for d in range(1, min(N, 8) + 1):
        if N % d == 0 and blk_bytes(d) <= (8 << 20):
            b_blk = d
    grid = (N // b_blk,)

    kernel = functools.partial(
        _rsbu_cw_kernel, B=b_blk, L=L, Lc1=Lc1, C=C, Cin=C_in, K=K,
        stride=stride, pad=pad, down_sample=down_sample)

    def const_spec(a):
        nd = a.ndim
        return pl.BlockSpec(a.shape, lambda i, _nd=nd: (0,) * _nd)

    in_specs = [pl.BlockSpec((b_blk, C_in, L), lambda i: (i, 0, 0))]
    in_specs += [const_spec(a) for a in args[1:]]
    out_spec = pl.BlockSpec((b_blk, C, Lc1), lambda i: (i, 0, 0))

    # explicit VMEM budget: (x block + out block + params) double-buffered,
    # plus the transposed-x slab and the two padded conv slabs; generous
    # headroom but under v7x's 64 MiB per-core VMEM.
    param_bytes = 4 * sum(int(a.size) for a in args[1:])
    scratch_bytes = 4 * (L * C + (L + 2 * pad) * C + (Lc1 + 2 * pad) * C)
    per_step = blk_bytes(b_blk) + param_bytes
    vmem_limit = int(min(56 << 20, max(8 << 20, 4 * (2 * per_step + scratch_bytes))))

    out_ncl = pl.pallas_call(
        kernel,
        out_shape=jax.ShapeDtypeStruct((N, C, Lc1), jnp.float32),
        grid_spec=pltpu.PrefetchScalarGridSpec(
            num_scalar_prefetch=0,
            grid=grid,
            in_specs=in_specs,
            out_specs=out_spec,
            scratch_shapes=[pltpu.VMEM((L, C), jnp.float32),
                            pltpu.VMEM((L + 2 * pad, C), jnp.float32),
                            pltpu.VMEM((Lc1 + 2 * pad, C), jnp.float32)]),
        compiler_params=pltpu.CompilerParams(
            dimension_semantics=("parallel",),
            vmem_limit_bytes=vmem_limit),
    )(*args)

    return out_ncl                                                 # already NCL


def init_params(key, c_in, c_out, K):
    ks = jax.random.split(key, 20)
    eps = 1e-5

    def bn_fold(kg, kb, km, kv, c):
        gamma = jax.random.uniform(kg, (c,), minval=0.5, maxval=1.5, dtype=jnp.float32)
        beta = 0.1 * jax.random.normal(kb, (c,), dtype=jnp.float32)
        mean = 0.1 * jax.random.normal(km, (c,), dtype=jnp.float32)
        var = jax.random.uniform(kv, (c,), minval=0.5, maxval=1.5, dtype=jnp.float32)
        s = gamma / jnp.sqrt(var + eps)
        return s, beta - mean * s

    p = {}
    p["bn1_s"], p["bn1_b"] = bn_fold(ks[0], ks[1], ks[2], ks[3], c_in)
    p["bn2_s"], p["bn2_b"] = bn_fold(ks[4], ks[5], ks[6], ks[7], c_out)
    p["fcbn_s"], p["fcbn_b"] = bn_fold(ks[8], ks[9], ks[10], ks[11], c_out)
    p["w1_oik"] = 0.3 * jax.random.normal(ks[12], (c_out, c_in, K), dtype=jnp.float32)
    p["b1"] = 0.1 * jax.random.normal(ks[13], (c_out,), dtype=jnp.float32)
    p["w2_oik"] = 0.3 * jax.random.normal(ks[14], (c_out, c_out, K), dtype=jnp.float32)
    p["b2"] = 0.1 * jax.random.normal(ks[15], (c_out,), dtype=jnp.float32)
    p["fc1_w"] = 0.3 * jax.random.normal(ks[16], (c_out, c_out), dtype=jnp.float32)
    p["fc1_b"] = 0.1 * jax.random.normal(ks[17], (c_out,), dtype=jnp.float32)
    p["fc2_w"] = 0.3 * jax.random.normal(ks[18], (c_out, c_out), dtype=jnp.float32)
    p["fc2_b"] = 0.1 * jax.random.normal(ks[19], (c_out,), dtype=jnp.float32)
    return p


def reference_forward(x_ncl, p, *, down_sample, c_in, c_out):
    """Pure-JAX reference mirroring the PyTorch forward (inference-mode BN)."""
    stride = 2 if down_sample else 1

    def bn_ncl(x, s, b):
        return x * s[None, :, None] + b[None, :, None]

    h = jnp.maximum(bn_ncl(x_ncl, p["bn1_s"], p["bn1_b"]), 0.0)
    y1 = jax.lax.conv_general_dilated(
        h, p["w1_oik"], (stride,), [(1, 1)],
        dimension_numbers=("NCH", "OIH", "NCH")) + p["b1"][None, :, None]
    h2 = jnp.maximum(bn_ncl(y1, p["bn2_s"], p["bn2_b"]), 0.0)
    y2 = jax.lax.conv_general_dilated(
        h2, p["w2_oik"], (1,), [(1, 1)],
        dimension_numbers=("NCH", "OIH", "NCH")) + p["b2"][None, :, None]

    x_abs = jnp.abs(y2)
    gap = jnp.mean(x_abs, axis=2)
    a = gap @ p["fc1_w"].T + p["fc1_b"]
    a = jnp.maximum(a * p["fcbn_s"] + p["fcbn_b"], 0.0)
    alpha = 1.0 / (1.0 + jnp.exp(-(a @ p["fc2_w"].T + p["fc2_b"])))
    thr = (gap * alpha)[:, :, None]
    n_sub = jnp.maximum(x_abs - thr, 0.0)
    xx = jnp.sign(y2) * n_sub

    res = x_ncl
    if down_sample:
        res = res[:, :, ::2]                    # AvgPool1d(kernel_size=1, stride=2)
    if c_in != c_out:
        res = jnp.pad(res, ((0, 0), (0, c_out - c_in), (0, 0)))
    return xx + res


if __name__ == "__main__":
    key = jax.random.PRNGKey(0)
    kx1, kp1, kx2, kp2 = jax.random.split(key, 4)

    # --- down-sampling block with channel expansion (C_in != C_out) --------
    N, C_in, C_out, L, K = 2, 4, 8, 16, 3
    x = jax.random.normal(kx1, (N, C_in, L), dtype=jnp.float32)
    params = init_params(kp1, C_in, C_out, K)
    out = jax.block_until_ready(
        rsbu_cw_forward(x, params, down_sample=True, kernel_size=K))
    ref = reference_forward(x, params, down_sample=True, c_in=C_in, c_out=C_out)
    assert out.shape == ref.shape, (out.shape, ref.shape)
    err1 = float(jnp.max(jnp.abs(out - ref)))
    assert err1 < 1e-4, f"downsample kernel/reference mismatch: max abs err = {err1}"

    # --- identity-stride block (C_in == C_out, stride 1) --------------------
    C2 = 8
    x2 = jax.random.normal(kx2, (N, C2, L), dtype=jnp.float32)
    params2 = init_params(kp2, C2, C2, K)
    out2 = jax.block_until_ready(
        rsbu_cw_forward(x2, params2, down_sample=False, kernel_size=K))
    ref2 = reference_forward(x2, params2, down_sample=False, c_in=C2, c_out=C2)
    assert out2.shape == ref2.shape, (out2.shape, ref2.shape)
    err2 = float(jnp.max(jnp.abs(out2 - ref2)))
    assert err2 < 1e-4, f"stride-1 kernel/reference mismatch: max abs err = {err2}"

    print("KERNEL_OK")
</pallas_src>

<mosaic_0001>
module attributes {stable_mosaic.version = 11 : i64} {
  func.func @_rsbu_cw_kernel(%arg0: i32, %arg1: memref<2x4x16xf32, #tpu.memory_space<vmem>>, %arg2: memref<1x8xf32, #tpu.memory_space<vmem>>, %arg3: memref<1x8xf32, #tpu.memory_space<vmem>>, %arg4: memref<3x8x8xf32, #tpu.memory_space<vmem>>, %arg5: memref<1x8xf32, #tpu.memory_space<vmem>>, %arg6: memref<1x8xf32, #tpu.memory_space<vmem>>, %arg7: memref<1x8xf32, #tpu.memory_space<vmem>>, %arg8: memref<3x8x8xf32, #tpu.memory_space<vmem>>, %arg9: memref<1x8xf32, #tpu.memory_space<vmem>>, %arg10: memref<8x8xf32, #tpu.memory_space<vmem>>, %arg11: memref<1x8xf32, #tpu.memory_space<vmem>>, %arg12: memref<1x8xf32, #tpu.memory_space<vmem>>, %arg13: memref<1x8xf32, #tpu.memory_space<vmem>>, %arg14: memref<8x8xf32, #tpu.memory_space<vmem>>, %arg15: memref<1x8xf32, #tpu.memory_space<vmem>>, %arg16: memref<2x8x8xf32, #tpu.memory_space<vmem>>, %arg17: memref<16x8xf32, #tpu.memory_space<vmem>>, %arg18: memref<18x8xf32, #tpu.memory_space<vmem>>, %arg19: memref<10x8xf32, #tpu.memory_space<vmem>>) attributes {dimension_semantics = [#tpu.dimension_semantics<parallel>], iteration_bounds = array<i64: 1>, scalar_prefetch = 0 : i64, scratch_operands = 3 : i64, tpu.core_type = #tpu.core_type<tc>, window_params = [{transform_indices = @transform_0, window_bounds = array<i64: 2, 4, 16>}, {pipeline_mode = #tpu.pipeline_mode<synchronous>, transform_indices = @transform_1, window_bounds = array<i64: 1, 8>}, {pipeline_mode = #tpu.pipeline_mode<synchronous>, transform_indices = @transform_2, window_bounds = array<i64: 1, 8>}, {pipeline_mode = #tpu.pipeline_mode<synchronous>, transform_indices = @transform_3, window_bounds = array<i64: 3, 8, 8>}, {pipeline_mode = #tpu.pipeline_mode<synchronous>, transform_indices = @transform_4, window_bounds = array<i64: 1, 8>}, {pipeline_mode = #tpu.pipeline_mode<synchronous>, transform_indices = @transform_5, window_bounds = array<i64: 1, 8>}, {pipeline_mode = #tpu.pipeline_mode<synchronous>, transform_indices = @transform_6, window_bounds = array<i64: 1, 8>}, {pipeline_mode = #tpu.pipeline_mode<synchronous>, transform_indices = @transform_7, window_bounds = array<i64: 3, 8, 8>}, {pipeline_mode = #tpu.pipeline_mode<synchronous>, transform_indices = @transform_8, window_bounds = array<i64: 1, 8>}, {pipeline_mode = #tpu.pipeline_mode<synchronous>, transform_indices = @transform_9, window_bounds = array<i64: 8, 8>}, {pipeline_mode = #tpu.pipeline_mode<synchronous>, transform_indices = @transform_10, window_bounds = array<i64: 1, 8>}, {pipeline_mode = #tpu.pipeline_mode<synchronous>, transform_indices = @transform_11, window_bounds = array<i64: 1, 8>}, {pipeline_mode = #tpu.pipeline_mode<synchronous>, transform_indices = @transform_12, window_bounds = array<i64: 1, 8>}, {pipeline_mode = #tpu.pipeline_mode<synchronous>, transform_indices = @transform_13, window_bounds = array<i64: 8, 8>}, {pipeline_mode = #tpu.pipeline_mode<synchronous>, transform_indices = @transform_14, window_bounds = array<i64: 1, 8>}, {transform_indices = @transform_15, window_bounds = array<i64: 2, 8, 8>}]} {
    %cst = arith.constant 0.000000e+00 : f32
    %0 = vector.broadcast %cst : f32 to vector<16x4xf32>
    %c0 = arith.constant 0 : index
    %c4 = arith.constant 4 : index
    %1 = vector.load %arg17[%c0, %c4] : memref<16x8xf32, #tpu.memory_space<vmem>>, vector<16x4xf32>
    tpu.vector_store %arg17[%c0, %c4], %0 {strides = array<i32>} : memref<16x8xf32, #tpu.memory_space<vmem>>, vector<16x4xf32>,
    %cst_0 = arith.constant 0.000000e+00 : f32
    %2 = vector.broadcast %cst_0 : f32 to vector<1x8xf32>
    %c0_1 = arith.constant 0 : index
    %c0_2 = arith.constant 0 : index
    %3 = vector.load %arg18[%c0_1, %c0_2] : memref<18x8xf32, #tpu.memory_space<vmem>>, vector<1x8xf32>
    tpu.vector_store %arg18[%c0_1, %c0_2], %2 {strides = array<i32>} : memref<18x8xf32, #tpu.memory_space<vmem>>, vector<1x8xf32>,
    %cst_3 = arith.constant 0.000000e+00 : f32
    %4 = vector.broadcast %cst_3 : f32 to vector<1x8xf32>
    %c17 = arith.constant 17 : index
    %c0_4 = arith.constant 0 : index
    %5 = vector.load %arg18[%c17, %c0_4] : memref<18x8xf32, #tpu.memory_space<vmem>>, vector<1x8xf32>
    tpu.vector_store %arg18[%c17, %c0_4], %4 {strides = array<i32>} : memref<18x8xf32, #tpu.memory_space<vmem>>, vector<1x8xf32>,
    %cst_5 = arith.constant 0.000000e+00 : f32
    %6 = vector.broadcast %cst_5 : f32 to vector<1x8xf32>
    %c0_6 = arith.constant 0 : index
    %c0_7 = arith.constant 0 : index
    %7 = vector.load %arg19[%c0_6, %c0_7] : memref<10x8xf32, #tpu.memory_space<vmem>>, vector<1x8xf32>
    tpu.vector_store %arg19[%c0_6, %c0_7], %6 {strides = array<i32>} : memref<10x8xf32, #tpu.memory_space<vmem>>, vector<1x8xf32>,
    %cst_8 = arith.constant 0.000000e+00 : f32
    %8 = vector.broadcast %cst_8 : f32 to vector<1x8xf32>
    %c9 = arith.constant 9 : index
    %c0_9 = arith.constant 0 : index
    %9 = vector.load %arg19[%c9, %c0_9] : memref<10x8xf32, #tpu.memory_space<vmem>>, vector<1x8xf32>
    tpu.vector_store %arg19[%c9, %c0_9], %8 {strides = array<i32>} : memref<10x8xf32, #tpu.memory_space<vmem>>, vector<1x8xf32>,
    %c0_10 = arith.constant 0 : index
    %c0_11 = arith.constant 0 : index
    %c0_12 = arith.constant 0 : index
    %10 = vector.load %arg1[%c0_10, %c0_11, %c0_12] : memref<2x4x16xf32, #tpu.memory_space<vmem>>, vector<1x4x16xf32>
    %11 = vector.shape_cast %10 : vector<1x4x16xf32> to vector<4x16xf32>
    %12 = tpu.transpose %11, [1, 0] : vector<4x16xf32> -> vector<16x4xf32>
    %c0_13 = arith.constant 0 : index
    %c0_14 = arith.constant 0 : index
    %13 = vector.load %arg17[%c0_13, %c0_14] : memref<16x8xf32, #tpu.memory_space<vmem>>, vector<16x4xf32>
    tpu.vector_store %arg17[%c0_13, %c0_14], %12 {strides = array<i32>} : memref<16x8xf32, #tpu.memory_space<vmem>>, vector<16x4xf32>,
    %c0_15 = arith.constant 0 : index
    %c0_16 = arith.constant 0 : index
    %14 = vector.load %arg17[%c0_15, %c0_16] : memref<16x8xf32, #tpu.memory_space<vmem>>, vector<16x8xf32>
    %c0_17 = arith.constant 0 : index
    %c0_18 = arith.constant 0 : index
    %15 = vector.load %arg2[%c0_17, %c0_18] : memref<1x8xf32, #tpu.memory_space<vmem>>, vector<1x8xf32>
    %16 = vector.broadcast %15 : vector<1x8xf32> to vector<16x8xf32>
    %17 = arith.mulf %14, %16 : vector<16x8xf32>
    %c0_19 = arith.constant 0 : index
    %c0_20 = arith.constant 0 : index
    %18 = vector.load %arg3[%c0_19, %c0_20] : memref<1x8xf32, #tpu.memory_space<vmem>>, vector<1x8xf32>
    %19 = vector.broadcast %18 : vector<1x8xf32> to vector<16x8xf32>
    %20 = arith.addf %17, %19 : vector<16x8xf32>
    %cst_21 = arith.constant 0.000000e+00 : f32
    %21 = vector.broadcast %cst_21 : f32 to vector<16x8xf32>
    %22 = arith.maximumf %20, %21 : vector<16x8xf32>
    %c1 = arith.constant 1 : index
    %c0_22 = arith.constant 0 : index
    %23 = vector.load %arg18[%c1, %c0_22] : memref<18x8xf32, #tpu.memory_space<vmem>>, vector<16x8xf32>
    tpu.vector_store %arg18[%c1, %c0_22], %22 {strides = array<i32>} : memref<18x8xf32, #tpu.memory_space<vmem>>, vector<16x8xf32>,
    %cst_23 = arith.constant 0.000000e+00 : f32
    %24 = vector.broadcast %cst_23 : f32 to vector<8x8xf32>
    %c0_24 = arith.constant 0 : index
    %c0_25 = arith.constant 0 : index
    %25 = tpu.strided_load %arg18[%c0_24, %c0_25] {strides = array<i32: 2, 1>} : memref<18x8xf32, #tpu.memory_space<vmem>>, vector<8x8xf32>
    %c0_26 = arith.constant 0 : index
    %c0_27 = arith.constant 0 : index
    %c0_28 = arith.constant 0 : index
    %26 = vector.load %arg4[%c0_26, %c0_27, %c0_28] : memref<3x8x8xf32, #tpu.memory_space<vmem>>, vector<1x8x8xf32>
    %27 = vector.shape_cast %26 : vector<1x8x8xf32> to vector<8x8xf32>
    %cst_29 = arith.constant dense<0.000000e+00> : vector<8x8xf32>
    %28 = tpu.matmul %25, %27, %cst_29 {dimension_numbers = #tpu.dot_dimension_numbers<[1], [0], [0], [1], [0, 0, 1, 1], [], []>} : vector<8x8xf32>, vector<8x8xf32>, vector<8x8xf32> -> vector<8x8xf32>
    %29 = arith.addf %24, %28 : vector<8x8xf32>
    %c1_30 = arith.constant 1 : index
    %c0_31 = arith.constant 0 : index
    %30 = tpu.strided_load %arg18[%c1_30, %c0_31] {strides = array<i32: 2, 1>} : memref<18x8xf32, #tpu.memory_space<vmem>>, vector<8x8xf32>
    %c1_32 = arith.constant 1 : index
    %c0_33 = arith.constant 0 : index
    %c0_34 = arith.constant 0 : index
    %31 = vector.load %arg4[%c1_32, %c0_33, %c0_34] : memref<3x8x8xf32, #tpu.memory_space<vmem>>, vector<1x8x8xf32>
    %32 = vector.shape_cast %31 : vector<1x8x8xf32> to vector<8x8xf32>
    %cst_35 = arith.constant dense<0.000000e+00> : vector<8x8xf32>
    %33 = tpu.matmul %30, %32, %cst_35 {dimension_numbers = #tpu.dot_dimension_numbers<[1], [0], [0], [1], [0, 0, 1, 1], [], []>} : vector<8x8xf32>, vector<8x8xf32>, vector<8x8xf32> -> vector<8x8xf32>
    %34 = arith.addf %29, %33 : vector<8x8xf32>
    %c2 = arith.constant 2 : index
    %c0_36 = arith.constant 0 : index
    %35 = tpu.strided_load %arg18[%c2, %c0_36] {strides = array<i32: 2, 1>} : memref<18x8xf32, #tpu.memory_space<vmem>>, vector<8x8xf32>
    %c2_37 = arith.constant 2 : index
    %c0_38 = arith.constant 0 : index
    %c0_39 = arith.constant 0 : index
    %36 = vector.load %arg4[%c2_37, %c0_38, %c0_39] : memref<3x8x8xf32, #tpu.memory_space<vmem>>, vector<1x8x8xf32>
    %37 = vector.shape_cast %36 : vector<1x8x8xf32> to vector<8x8xf32>
    %cst_40 = arith.constant dense<0.000000e+00> : vector<8x8xf32>
    %38 = tpu.matmul %35, %37, %cst_40 {dimension_numbers = #tpu.dot_dimension_numbers<[1], [0], [0], [1], [0, 0, 1, 1], [], []>} : vector<8x8xf32>, vector<8x8xf32>, vector<8x8xf32> -> vector<8x8xf32>
    %39 = arith.addf %34, %38 : vector<8x8xf32>
    %c0_41 = arith.constant 0 : index
    %c0_42 = arith.constant 0 : index
    %40 = vector.load %arg5[%c0_41, %c0_42] : memref<1x8xf32, #tpu.memory_space<vmem>>, vector<1x8xf32>
    %41 = vector.broadcast %40 : vector<1x8xf32> to vector<8x8xf32>
    %42 = arith.addf %39, %41 : vector<8x8xf32>
    %c0_43 = arith.constant 0 : index
    %c0_44 = arith.constant 0 : index
    %43 = vector.load %arg6[%c0_43, %c0_44] : memref<1x8xf32, #tpu.memory_space<vmem>>, vector<1x8xf32>
    %44 = vector.broadcast %43 : vector<1x8xf32> to vector<8x8xf32>
    %45 = arith.mulf %42, %44 : vector<8x8xf32>
    %c0_45 = arith.constant 0 : index
    %c0_46 = arith.constant 0 : index
    %46 = vector.load %arg7[%c0_45, %c0_46] : memref<1x8xf32, #tpu.memory_space<vmem>>, vector<1x8xf32>
    %47 = vector.broadcast %46 : vector<1x8xf32> to vector<8x8xf32>
    %48 = arith.addf %45, %47 : vector<8x8xf32>
    %cst_47 = arith.constant 0.000000e+00 : f32
    %49 = vector.broadcast %cst_47 : f32 to vector<8x8xf32>
    %50 = arith.maximumf %48, %49 : vector<8x8xf32>
    %c1_48 = arith.constant 1 : index
    %c0_49 = arith.constant 0 : index
    %51 = vector.load %arg19[%c1_48, %c0_49] : memref<10x8xf32, #tpu.memory_space<vmem>>, vector<8x8xf32>
    tpu.vector_store %arg19[%c1_48, %c0_49], %50 {strides = array<i32>} : memref<10x8xf32, #tpu.memory_space<vmem>>, vector<8x8xf32>,
    %cst_50 = arith.constant 0.000000e+00 : f32
    %52 = vector.broadcast %cst_50 : f32 to vector<8x8xf32>
    %c0_51 = arith.constant 0 : index
    %c0_52 = arith.constant 0 : index
    %53 = vector.load %arg19[%c0_51, %c0_52] : memref<10x8xf32, #tpu.memory_space<vmem>>, vector<8x8xf32>
    %c0_53 = arith.constant 0 : index
    %c0_54 = arith.constant 0 : index
    %c0_55 = arith.constant 0 : index
    %54 = vector.load %arg8[%c0_53, %c0_54, %c0_55] : memref<3x8x8xf32, #tpu.memory_space<vmem>>, vector<1x8x8xf32>
    %55 = vector.shape_cast %54 : vector<1x8x8xf32> to vector<8x8xf32>
    %cst_56 = arith.constant dense<0.000000e+00> : vector<8x8xf32>
    %56 = tpu.matmul %53, %55, %cst_56 {dimension_numbers = #tpu.dot_dimension_numbers<[1], [0], [0], [1], [0, 0, 1, 1], [], []>} : vector<8x8xf32>, vector<8x8xf32>, vector<8x8xf32> -> vector<8x8xf32>
    %57 = arith.addf %52, %56 : vector<8x8xf32>
    %c1_57 = arith.constant 1 : index
    %c0_58 = arith.constant 0 : index
    %58 = vector.load %arg19[%c1_57, %c0_58] : memref<10x8xf32, #tpu.memory_space<vmem>>, vector<8x8xf32>
    %c1_59 = arith.constant 1 : index
    %c0_60 = arith.constant 0 : index
    %c0_61 = arith.constant 0 : index
    %59 = vector.load %arg8[%c1_59, %c0_60, %c0_61] : memref<3x8x8xf32, #tpu.memory_space<vmem>>, vector<1x8x8xf32>
    %60 = vector.shape_cast %59 : vector<1x8x8xf32> to vector<8x8xf32>
    %cst_62 = arith.constant dense<0.000000e+00> : vector<8x8xf32>
    %61 = tpu.matmul %58, %60, %cst_62 {dimension_numbers = #tpu.dot_dimension_numbers<[1], [0], [0], [1], [0, 0, 1, 1], [], []>} : vector<8x8xf32>, vector<8x8xf32>, vector<8x8xf32> -> vector<8x8xf32>
    %62 = arith.addf %57, %61 : vector<8x8xf32>
    %c2_63 = arith.constant 2 : index
    %c0_64 = arith.constant 0 : index
    %63 = vector.load %arg19[%c2_63, %c0_64] : memref<10x8xf32, #tpu.memory_space<vmem>>, vector<8x8xf32>
    %c2_65 = arith.constant 2 : index
    %c0_66 = arith.constant 0 : index
    %c0_67 = arith.constant 0 : index
    %64 = vector.load %arg8[%c2_65, %c0_66, %c0_67] : memref<3x8x8xf32, #tpu.memory_space<vmem>>, vector<1x8x8xf32>
    %65 = vector.shape_cast %64 : vector<1x8x8xf32> to vector<8x8xf32>
    %cst_68 = arith.constant dense<0.000000e+00> : vector<8x8xf32>
    %66 = tpu.matmul %63, %65, %cst_68 {dimension_numbers = #tpu.dot_dimension_numbers<[1], [0], [0], [1], [0, 0, 1, 1], [], []>} : vector<8x8xf32>, vector<8x8xf32>, vector<8x8xf32> -> vector<8x8xf32>
    %67 = arith.addf %62, %66 : vector<8x8xf32>
    %c0_69 = arith.constant 0 : index
    %c0_70 = arith.constant 0 : index
    %68 = vector.load %arg9[%c0_69, %c0_70] : memref<1x8xf32, #tpu.memory_space<vmem>>, vector<1x8xf32>
    %69 = vector.broadcast %68 : vector<1x8xf32> to vector<8x8xf32>
    %70 = arith.addf %67, %69 : vector<8x8xf32>
    %71 = math.absf %70 : vector<8x8xf32>
    %cst_71 = arith.constant dense<0.000000e+00> : vector<8xf32>
    %72 = vector.multi_reduction <add>, %71, %cst_71 [0] : vector<8x8xf32> to vector<8xf32>
    %73 = vector.shape_cast %72 : vector<8xf32> to vector<1x8xf32>
    %cst_72 = arith.constant 1.250000e-01 : f32
    %74 = vector.broadcast %cst_72 : f32 to vector<1x8xf32>
    %75 = arith.mulf %73, %74 : vector<1x8xf32>
    %c0_73 = arith.constant 0 : index
    %c0_74 = arith.constant 0 : index
    %76 = vector.load %arg10[%c0_73, %c0_74] : memref<8x8xf32, #tpu.memory_space<vmem>>, vector<8x8xf32>
    %cst_75 = arith.constant dense<0.000000e+00> : vector<1x8xf32>
    %77 = tpu.matmul %75, %76, %cst_75 {dimension_numbers = #tpu.dot_dimension_numbers<[1], [0], [0], [1], [0, 0, 1, 1], [], []>} : vector<1x8xf32>, vector<8x8xf32>, vector<1x8xf32> -> vector<1x8xf32>
    %c0_76 = arith.constant 0 : index
    %c0_77 = arith.constant 0 : index
    %78 = vector.load %arg11[%c0_76, %c0_77] : memref<1x8xf32, #tpu.memory_space<vmem>>, vector<1x8xf32>
    %79 = arith.addf %77, %78 : vector<1x8xf32>
    %c0_78 = arith.constant 0 : index
    %c0_79 = arith.constant 0 : index
    %80 = vector.load %arg12[%c0_78, %c0_79] : memref<1x8xf32, #tpu.memory_space<vmem>>, vector<1x8xf32>
    %81 = arith.mulf %79, %80 : vector<1x8xf32>
    %c0_80 = arith.constant 0 : index
    %c0_81 = arith.constant 0 : index
    %82 = vector.load %arg13[%c0_80, %c0_81] : memref<1x8xf32, #tpu.memory_space<vmem>>, vector<1x8xf32>
    %83 = arith.addf %81, %82 : vector<1x8xf32>
    %cst_82 = arith.constant 0.000000e+00 : f32
    %84 = vector.broadcast %cst_82 : f32 to vector<1x8xf32>
    %85 = arith.maximumf %83, %84 : vector<1x8xf32>
    %c0_83 = arith.constant 0 : index
    %c0_84 = arith.constant 0 : index
    %86 = vector.load %arg14[%c0_83, %c0_84] : memref<8x8xf32, #tpu.memory_space<vmem>>, vector<8x8xf32>
    %cst_85 = arith.constant dense<0.000000e+00> : vector<1x8xf32>
    %87 = tpu.matmul %85, %86, %cst_85 {dimension_numbers = #tpu.dot_dimension_numbers<[1], [0], [0], [1], [0, 0, 1, 1], [], []>} : vector<1x8xf32>, vector<8x8xf32>, vector<1x8xf32> -> vector<1x8xf32>
    %c0_86 = arith.constant 0 : index
    %c0_87 = arith.constant 0 : index
    %88 = vector.load %arg15[%c0_86, %c0_87] : memref<1x8xf32, #tpu.memory_space<vmem>>, vector<1x8xf32>
    %89 = arith.addf %87, %88 : vector<1x8xf32>
    %cst_88 = arith.constant 0.000000e+00 : f32
    %90 = vector.broadcast %cst_88 : f32 to vector<1x8xf32>
    %91 = arith.subf %90, %89 : vector<1x8xf32>
    %92 = math.exp %91 : vector<1x8xf32>
    %cst_89 = arith.constant 1.000000e+00 : f32
    %93 = vector.broadcast %cst_89 : f32 to vector<1x8xf32>
    %94 = arith.addf %93, %92 : vector<1x8xf32>
    %cst_90 = arith.constant 1.000000e+00 : f32
    %95 = vector.broadcast %cst_90 : f32 to vector<1x8xf32>
    %96 = arith.divf %95, %94 : vector<1x8xf32>
    %97 = arith.mulf %75, %96 : vector<1x8xf32>
    %cst_91 = arith.constant 0.000000e+00 : f32
    %98 = vector.broadcast %cst_91 : f32 to vector<1x8xf32>
    %99 = arith.subf %98, %97 : vector<1x8xf32>
    %100 = vector.broadcast %99 : vector<1x8xf32> to vector<8x8xf32>
    %101 = arith.maximumf %100, %70 : vector<8x8xf32>
    %102 = vector.broadcast %97 : vector<1x8xf32> to vector<8x8xf32>
    %103 = arith.minimumf %102, %101 : vector<8x8xf32>
    %104 = arith.subf %70, %103 : vector<8x8xf32>
    %c0_92 = arith.constant 0 : index
    %c0_93 = arith.constant 0 : index
    %105 = tpu.strided_load %arg17[%c0_92, %c0_93] {strides = array<i32: 2, 1>} : memref<16x8xf32, #tpu.memory_space<vmem>>, vector<8x8xf32>
    %106 = arith.addf %104, %105 : vector<8x8xf32>
    %107 = tpu.transpose %106, [1, 0] : vector<8x8xf32> -> vector<8x8xf32>
    %c0_94 = arith.constant 0 : index
    %c0_95 = arith.constant 0 : index
    %c0_96 = arith.constant 0 : index
    %108 = vector.load %arg16[%c0_94, %c0_95, %c0_96] : memref<2x8x8xf32, #tpu.memory_space<vmem>>, vector<1x8x8xf32>
    %109 = vector.shape_cast %108 : vector<1x8x8xf32> to vector<8x8xf32>
    %110 = vector.shape_cast %107 : vector<8x8xf32> to vector<1x8x8xf32>
    tpu.vector_store %arg16[%c0_94, %c0_95, %c0_96], %110 {strides = array<i32>} : memref<2x8x8xf32, #tpu.memory_space<vmem>>, vector<1x8x8xf32>,
    %c1_97 = arith.constant 1 : index
    %c0_98 = arith.constant 0 : index
    %c0_99 = arith.constant 0 : index
    %111 = vector.load %arg1[%c1_97, %c0_98, %c0_99] : memref<2x4x16xf32, #tpu.memory_space<vmem>>, vector<1x4x16xf32>
    %112 = vector.shape_cast %111 : vector<1x4x16xf32> to vector<4x16xf32>
    %113 = tpu.transpose %112, [1, 0] : vector<4x16xf32> -> vector<16x4xf32>
    %c0_100 = arith.constant 0 : index
    %c0_101 = arith.constant 0 : index
    %114 = vector.load %arg17[%c0_100, %c0_101] : memref<16x8xf32, #tpu.memory_space<vmem>>, vector<16x4xf32>
    tpu.vector_store %arg17[%c0_100, %c0_101], %113 {strides = array<i32>} : memref<16x8xf32, #tpu.memory_space<vmem>>, vector<16x4xf32>,
    %c0_102 = arith.constant 0 : index
    %c0_103 = arith.constant 0 : index
    %115 = vector.load %arg17[%c0_102, %c0_103] : memref<16x8xf32, #tpu.memory_space<vmem>>, vector<16x8xf32>
    %c0_104 = arith.constant 0 : index
    %c0_105 = arith.constant 0 : index
    %116 = vector.load %arg2[%c0_104, %c0_105] : memref<1x8xf32, #tpu.memory_space<vmem>>, vector<1x8xf32>
    %117 = vector.broadcast %116 : vector<1x8xf32> to vector<16x8xf32>
    %118 = arith.mulf %115, %117 : vector<16x8xf32>
    %c0_106 = arith.constant 0 : index
    %c0_107 = arith.constant 0 : index
    %119 = vector.load %arg3[%c0_106, %c0_107] : memref<1x8xf32, #tpu.memory_space<vmem>>, vector<1x8xf32>
    %120 = vector.broadcast %119 : vector<1x8xf32> to vector<16x8xf32>
    %121 = arith.addf %118, %120 : vector<16x8xf32>
    %cst_108 = arith.constant 0.000000e+00 : f32
    %122 = vector.broadcast %cst_108 : f32 to vector<16x8xf32>
    %123 = arith.maximumf %121, %122 : vector<16x8xf32>
    %c1_109 = arith.constant 1 : index
    %c0_110 = arith.constant 0 : index
    %124 = vector.load %arg18[%c1_109, %c0_110] : memref<18x8xf32, #tpu.memory_space<vmem>>, vector<16x8xf32>
    tpu.vector_store %arg18[%c1_109, %c0_110], %123 {strides = array<i32>} : memref<18x8xf32, #tpu.memory_space<vmem>>, vector<16x8xf32>,
    %cst_111 = arith.constant 0.000000e+00 : f32
    %125 = vector.broadcast %cst_111 : f32 to vector<8x8xf32>
    %c0_112 = arith.constant 0 : index
    %c0_113 = arith.constant 0 : index
    %126 = tpu.strided_load %arg18[%c0_112, %c0_113] {strides = array<i32: 2, 1>} : memref<18x8xf32, #tpu.memory_space<vmem>>, vector<8x8xf32>
    %c0_114 = arith.constant 0 : index
    %c0_115 = arith.constant 0 : index
    %c0_116 = arith.constant 0 : index
    %127 = vector.load %arg4[%c0_114, %c0_115, %c0_116] : memref<3x8x8xf32, #tpu.memory_space<vmem>>, vector<1x8x8xf32>
    %128 = vector.shape_cast %127 : vector<1x8x8xf32> to vector<8x8xf32>
    %cst_117 = arith.constant dense<0.000000e+00> : vector<8x8xf32>
    %129 = tpu.matmul %126, %128, %cst_117 {dimension_numbers = #tpu.dot_dimension_numbers<[1], [0], [0], [1], [0, 0, 1, 1], [], []>} : vector<8x8xf32>, vector<8x8xf32>, vector<8x8xf32> -> vector<8x8xf32>
    %130 = arith.addf %125, %129 : vector<8x8xf32>
    %c1_118 = arith.constant 1 : index
    %c0_119 = arith.constant 0 : index
    %131 = tpu.strided_load %arg18[%c1_118, %c0_119] {strides = array<i32: 2, 1>} : memref<18x8xf32, #tpu.memory_space<vmem>>, vector<8x8xf32>
    %c1_120 = arith.constant 1 : index
    %c0_121 = arith.constant 0 : index
    %c0_122 = arith.constant 0 : index
    %132 = vector.load %arg4[%c1_120, %c0_121, %c0_122] : memref<3x8x8xf32, #tpu.memory_space<vmem>>, vector<1x8x8xf32>
    %133 = vector.shape_cast %132 : vector<1x8x8xf32> to vector<8x8xf32>
    %cst_123 = arith.constant dense<0.000000e+00> : vector<8x8xf32>
    %134 = tpu.matmul %131, %133, %cst_123 {dimension_numbers = #tpu.dot_dimension_numbers<[1], [0], [0], [1], [0, 0, 1, 1], [], []>} : vector<8x8xf32>, vector<8x8xf32>, vector<8x8xf32> -> vector<8x8xf32>
    %135 = arith.addf %130, %134 : vector<8x8xf32>
    %c2_124 = arith.constant 2 : index
    %c0_125 = arith.constant 0 : index
    %136 = tpu.strided_load %arg18[%c2_124, %c0_125] {strides = array<i32: 2, 1>} : memref<18x8xf32, #tpu.memory_space<vmem>>, vector<8x8xf32>
    %c2_126 = arith.constant 2 : index
    %c0_127 = arith.constant 0 : index
    %c0_128 = arith.constant 0 : index
    %137 = vector.load %arg4[%c2_126, %c0_127, %c0_128] : memref<3x8x8xf32, #tpu.memory_space<vmem>>, vector<1x8x8xf32>
    %138 = vector.shape_cast %137 : vector<1x8x8xf32> to vector<8x8xf32>
    %cst_129 = arith.constant dense<0.000000e+00> : vector<8x8xf32>
    %139 = tpu.matmul %136, %138, %cst_129 {dimension_numbers = #tpu.dot_dimension_numbers<[1], [0], [0], [1], [0, 0, 1, 1], [], []>} : vector<8x8xf32>, vector<8x8xf32>, vector<8x8xf32> -> vector<8x8xf32>
    %140 = arith.addf %135, %139 : vector<8x8xf32>
    %c0_130 = arith.constant 0 : index
    %c0_131 = arith.constant 0 : index
    %141 = vector.load %arg5[%c0_130, %c0_131] : memref<1x8xf32, #tpu.memory_space<vmem>>, vector<1x8xf32>
    %142 = vector.broadcast %141 : vector<1x8xf32> to vector<8x8xf32>
    %143 = arith.addf %140, %142 : vector<8x8xf32>
    %c0_132 = arith.constant 0 : index
    %c0_133 = arith.constant 0 : index
    %144 = vector.load %arg6[%c0_132, %c0_133] : memref<1x8xf32, #tpu.memory_space<vmem>>, vector<1x8xf32>
    %145 = vector.broadcast %144 : vector<1x8xf32> to vector<8x8xf32>
    %146 = arith.mulf %143, %145 : vector<8x8xf32>
    %c0_134 = arith.constant 0 : index
    %c0_135 = arith.constant 0 : index
    %147 = vector.load %arg7[%c0_134, %c0_135] : memref<1x8xf32, #tpu.memory_space<vmem>>, vector<1x8xf32>
    %148 = vector.broadcast %147 : vector<1x8xf32> to vector<8x8xf32>
    %149 = arith.addf %146, %148 : vector<8x8xf32>
    %cst_136 = arith.constant 0.000000e+00 : f32
    %150 = vector.broadcast %cst_136 : f32 to vector<8x8xf32>
    %151 = arith.maximumf %149, %150 : vector<8x8xf32>
    %c1_137 = arith.constant 1 : index
    %c0_138 = arith.constant 0 : index
    %152 = vector.load %arg19[%c1_137, %c0_138] : memref<10x8xf32, #tpu.memory_space<vmem>>, vector<8x8xf32>
    tpu.vector_store %arg19[%c1_137, %c0_138], %151 {strides = array<i32>} : memref<10x8xf32, #tpu.memory_space<vmem>>, vector<8x8xf32>,
    %cst_139 = arith.constant 0.000000e+00 : f32
    %153 = vector.broadcast %cst_139 : f32 to vector<8x8xf32>
    %c0_140 = arith.constant 0 : index
    %c0_141 = arith.constant 0 : index
    %154 = vector.load %arg19[%c0_140, %c0_141] : memref<10x8xf32, #tpu.memory_space<vmem>>, vector<8x8xf32>
    %c0_142 = arith.constant 0 : index
    %c0_143 = arith.constant 0 : index
    %c0_144 = arith.constant 0 : index
    %155 = vector.load %arg8[%c0_142, %c0_143, %c0_144] : memref<3x8x8xf32, #tpu.memory_space<vmem>>, vector<1x8x8xf32>
    %156 = vector.shape_cast %155 : vector<1x8x8xf32> to vector<8x8xf32>
    %cst_145 = arith.constant dense<0.000000e+00> : vector<8x8xf32>
    %157 = tpu.matmul %154, %156, %cst_145 {dimension_numbers = #tpu.dot_dimension_numbers<[1], [0], [0], [1], [0, 0, 1, 1], [], []>} : vector<8x8xf32>, vector<8x8xf32>, vector<8x8xf32> -> vector<8x8xf32>
    %158 = arith.addf %153, %157 : vector<8x8xf32>
    %c1_146 = arith.constant 1 : index
    %c0_147 = arith.constant 0 : index
    %159 = vector.load %arg19[%c1_146, %c0_147] : memref<10x8xf32, #tpu.memory_space<vmem>>, vector<8x8xf32>
    %c1_148 = arith.constant 1 : index
    %c0_149 = arith.constant 0 : index
    %c0_150 = arith.constant 0 : index
    %160 = vector.load %arg8[%c1_148, %c0_149, %c0_150] : memref<3x8x8xf32, #tpu.memory_space<vmem>>, vector<1x8x8xf32>
    %161 = vector.shape_cast %160 : vector<1x8x8xf32> to vector<8x8xf32>
    %cst_151 = arith.constant dense<0.000000e+00> : vector<8x8xf32>
    %162 = tpu.matmul %159, %161, %cst_151 {dimension_numbers = #tpu.dot_dimension_numbers<[1], [0], [0], [1], [0, 0, 1, 1], [], []>} : vector<8x8xf32>, vector<8x8xf32>, vector<8x8xf32> -> vector<8x8xf32>
    %163 = arith.addf %158, %162 : vector<8x8xf32>
    %c2_152 = arith.constant 2 : index
    %c0_153 = arith.constant 0 : index
    %164 = vector.load %arg19[%c2_152, %c0_153] : memref<10x8xf32, #tpu.memory_space<vmem>>, vector<8x8xf32>
    %c2_154 = arith.constant 2 : index
    %c0_155 = arith.constant 0 : index
    %c0_156 = arith.constant 0 : index
    %165 = vector.load %arg8[%c2_154, %c0_155, %c0_156] : memref<3x8x8xf32, #tpu.memory_space<vmem>>, vector<1x8x8xf32>
    %166 = vector.shape_cast %165 : vector<1x8x8xf32> to vector<8x8xf32>
    %cst_157 = arith.constant dense<0.000000e+00> : vector<8x8xf32>
    %167 = tpu.matmul %164, %166, %cst_157 {dimension_numbers = #tpu.dot_dimension_numbers<[1], [0], [0], [1], [0, 0, 1, 1], [], []>} : vector<8x8xf32>, vector<8x8xf32>, vector<8x8xf32> -> vector<8x8xf32>
    %168 = arith.addf %163, %167 : vector<8x8xf32>
    %c0_158 = arith.constant 0 : index
    %c0_159 = arith.constant 0 : index
    %169 = vector.load %arg9[%c0_158, %c0_159] : memref<1x8xf32, #tpu.memory_space<vmem>>, vector<1x8xf32>
    %170 = vector.broadcast %169 : vector<1x8xf32> to vector<8x8xf32>
    %171 = arith.addf %168, %170 : vector<8x8xf32>
    %172 = math.absf %171 : vector<8x8xf32>
    %cst_160 = arith.constant dense<0.000000e+00> : vector<8xf32>
    %173 = vector.multi_reduction <add>, %172, %cst_160 [0] : vector<8x8xf32> to vector<8xf32>
    %174 = vector.shape_cast %173 : vector<8xf32> to vector<1x8xf32>
    %cst_161 = arith.constant 1.250000e-01 : f32
    %175 = vector.broadcast %cst_161 : f32 to vector<1x8xf32>
    %176 = arith.mulf %174, %175 : vector<1x8xf32>
    %c0_162 = arith.constant 0 : index
    %c0_163 = arith.constant 0 : index
    %177 = vector.load %arg10[%c0_162, %c0_163] : memref<8x8xf32, #tpu.memory_space<vmem>>, vector<8x8xf32>
    %cst_164 = arith.constant dense<0.000000e+00> : vector<1x8xf32>
    %178 = tpu.matmul %176, %177, %cst_164 {dimension_numbers = #tpu.dot_dimension_numbers<[1], [0], [0], [1], [0, 0, 1, 1], [], []>} : vector<1x8xf32>, vector<8x8xf32>, vector<1x8xf32> -> vector<1x8xf32>
    %c0_165 = arith.constant 0 : index
    %c0_166 = arith.constant 0 : index
    %179 = vector.load %arg11[%c0_165, %c0_166] : memref<1x8xf32, #tpu.memory_space<vmem>>, vector<1x8xf32>
    %180 = arith.addf %178, %179 : vector<1x8xf32>
    %c0_167 = arith.constant 0 : index
    %c0_168 = arith.constant 0 : index
    %181 = vector.load %arg12[%c0_167, %c0_168] : memref<1x8xf32, #tpu.memory_space<vmem>>, vector<1x8xf32>
    %182 = arith.mulf %180, %181 : vector<1x8xf32>
    %c0_169 = arith.constant 0 : index
    %c0_170 = arith.constant 0 : index
    %183 = vector.load %arg13[%c0_169, %c0_170] : memref<1x8xf32, #tpu.memory_space<vmem>>, vector<1x8xf32>
    %184 = arith.addf %182, %183 : vector<1x8xf32>
    %cst_171 = arith.constant 0.000000e+00 : f32
    %185 = vector.broadcast %cst_171 : f32 to vector<1x8xf32>
    %186 = arith.maximumf %184, %185 : vector<1x8xf32>
    %c0_172 = arith.constant 0 : index
    %c0_173 = arith.constant 0 : index
    %187 = vector.load %arg14[%c0_172, %c0_173] : memref<8x8xf32, #tpu.memory_space<vmem>>, vector<8x8xf32>
    %cst_174 = arith.constant dense<0.000000e+00> : vector<1x8xf32>
    %188 = tpu.matmul %186, %187, %cst_174 {dimension_numbers = #tpu.dot_dimension_numbers<[1], [0], [0], [1], [0, 0, 1, 1], [], []>} : vector<1x8xf32>, vector<8x8xf32>, vector<1x8xf32> -> vector<1x8xf32>
    %c0_175 = arith.constant 0 : index
    %c0_176 = arith.constant 0 : index
    %189 = vector.load %arg15[%c0_175, %c0_176] : memref<1x8xf32, #tpu.memory_space<vmem>>, vector<1x8xf32>
    %190 = arith.addf %188, %189 : vector<1x8xf32>
    %cst_177 = arith.constant 0.000000e+00 : f32
    %191 = vector.broadcast %cst_177 : f32 to vector<1x8xf32>
    %192 = arith.subf %191, %190 : vector<1x8xf32>
    %193 = math.exp %192 : vector<1x8xf32>
    %cst_178 = arith.constant 1.000000e+00 : f32
    %194 = vector.broadcast %cst_178 : f32 to vector<1x8xf32>
    %195 = arith.addf %194, %193 : vector<1x8xf32>
    %cst_179 = arith.constant 1.000000e+00 : f32
    %196 = vector.broadcast %cst_179 : f32 to vector<1x8xf32>
    %197 = arith.divf %196, %195 : vector<1x8xf32>
    %198 = arith.mulf %176, %197 : vector<1x8xf32>
    %cst_180 = arith.constant 0.000000e+00 : f32
    %199 = vector.broadcast %cst_180 : f32 to vector<1x8xf32>
    %200 = arith.subf %199, %198 : vector<1x8xf32>
    %201 = vector.broadcast %200 : vector<1x8xf32> to vector<8x8xf32>
    %202 = arith.maximumf %201, %171 : vector<8x8xf32>
    %203 = vector.broadcast %198 : vector<1x8xf32> to vector<8x8xf32>
    %204 = arith.minimumf %203, %202 : vector<8x8xf32>
    %205 = arith.subf %171, %204 : vector<8x8xf32>
    %c0_181 = arith.constant 0 : index
    %c0_182 = arith.constant 0 : index
    %206 = tpu.strided_load %arg17[%c0_181, %c0_182] {strides = array<i32: 2, 1>} : memref<16x8xf32, #tpu.memory_space<vmem>>, vector<8x8xf32>
    %207 = arith.addf %205, %206 : vector<8x8xf32>
    %208 = tpu.transpose %207, [1, 0] : vector<8x8xf32> -> vector<8x8xf32>
    %c1_183 = arith.constant 1 : index
    %c0_184 = arith.constant 0 : index
    %c0_185 = arith.constant 0 : index
    %209 = vector.load %arg16[%c1_183, %c0_184, %c0_185] : memref<2x8x8xf32, #tpu.memory_space<vmem>>, vector<1x8x8xf32>
    %210 = vector.shape_cast %209 : vector<1x8x8xf32> to vector<8x8xf32>
    %211 = vector.shape_cast %208 : vector<8x8xf32> to vector<1x8x8xf32>
    tpu.vector_store %arg16[%c1_183, %c0_184, %c0_185], %211 {strides = array<i32>} : memref<2x8x8xf32, #tpu.memory_space<vmem>>, vector<1x8x8xf32>,
    return
  }
  func.func @transform_0(%arg0: i32) -> (i32, i32, i32) {
    %c0_i32 = arith.constant 0 : i32
    %c0_i32_0 = arith.constant 0 : i32
    %c0_i32_1 = arith.constant 0 : i32
    return %arg0, %c0_i32, %c0_i32_0 : i32, i32, i32
  }
  func.func @transform_1(%arg0: i32) -> (i32, i32) {
    %c0_i32 = arith.constant 0 : i32
    %c0_i32_0 = arith.constant 0 : i32
    %c0_i32_1 = arith.constant 0 : i32
    return %c0_i32, %c0_i32_0 : i32, i32
  }
  func.func @transform_2(%arg0: i32) -> (i32, i32) {
    %c0_i32 = arith.constant 0 : i32
    %c0_i32_0 = arith.constant 0 : i32
    %c0_i32_1 = arith.constant 0 : i32
    return %c0_i32, %c0_i32_0 : i32, i32
  }
  func.func @transform_3(%arg0: i32) -> (i32, i32, i32) {
    %c0_i32 = arith.constant 0 : i32
    %c0_i32_0 = arith.constant 0 : i32
    %c0_i32_1 = arith.constant 0 : i32
    %c0_i32_2 = arith.constant 0 : i32
    return %c0_i32, %c0_i32_0, %c0_i32_1 : i32, i32, i32
  }
  func.func @transform_4(%arg0: i32) -> (i32, i32) {
    %c0_i32 = arith.constant 0 : i32
    %c0_i32_0 = arith.constant 0 : i32
    %c0_i32_1 = arith.constant 0 : i32
    return %c0_i32, %c0_i32_0 : i32, i32
  }
  func.func @transform_5(%arg0: i32) -> (i32, i32) {
    %c0_i32 = arith.constant 0 : i32
    %c0_i32_0 = arith.constant 0 : i32
    %c0_i32_1 = arith.constant 0 : i32
    return %c0_i32, %c0_i32_0 : i32, i32
  }
  func.func @transform_6(%arg0: i32) -> (i32, i32) {
    %c0_i32 = arith.constant 0 : i32
    %c0_i32_0 = arith.constant 0 : i32
    %c0_i32_1 = arith.constant 0 : i32
    return %c0_i32, %c0_i32_0 : i32, i32
  }
  func.func @transform_7(%arg0: i32) -> (i32, i32, i32) {
    %c0_i32 = arith.constant 0 : i32
    %c0_i32_0 = arith.constant 0 : i32
    %c0_i32_1 = arith.constant 0 : i32
    %c0_i32_2 = arith.constant 0 : i32
    return %c0_i32, %c0_i32_0, %c0_i32_1 : i32, i32, i32
  }
  func.func @transform_8(%arg0: i32) -> (i32, i32) {
    %c0_i32 = arith.constant 0 : i32
    %c0_i32_0 = arith.constant 0 : i32
    %c0_i32_1 = arith.constant 0 : i32
    return %c0_i32, %c0_i32_0 : i32, i32
  }
  func.func @transform_9(%arg0: i32) -> (i32, i32) {
    %c0_i32 = arith.constant 0 : i32
    %c0_i32_0 = arith.constant 0 : i32
    %c0_i32_1 = arith.constant 0 : i32
    return %c0_i32, %c0_i32_0 : i32, i32
  }
  func.func @transform_10(%arg0: i32) -> (i32, i32) {
    %c0_i32 = arith.constant 0 : i32
    %c0_i32_0 = arith.constant 0 : i32
    %c0_i32_1 = arith.constant 0 : i32
    return %c0_i32, %c0_i32_0 : i32, i32
  }
  func.func @transform_11(%arg0: i32) -> (i32, i32) {
    %c0_i32 = arith.constant 0 : i32
    %c0_i32_0 = arith.constant 0 : i32
    %c0_i32_1 = arith.constant 0 : i32
    return %c0_i32, %c0_i32_0 : i32, i32
  }
  func.func @transform_12(%arg0: i32) -> (i32, i32) {
    %c0_i32 = arith.constant 0 : i32
    %c0_i32_0 = arith.constant 0 : i32
    %c0_i32_1 = arith.constant 0 : i32
    return %c0_i32, %c0_i32_0 : i32, i32
  }
  func.func @transform_13(%arg0: i32) -> (i32, i32) {
    %c0_i32 = arith.constant 0 : i32
    %c0_i32_0 = arith.constant 0 : i32
    %c0_i32_1 = arith.constant 0 : i32
    return %c0_i32, %c0_i32_0 : i32, i32
  }
  func.func @transform_14(%arg0: i32) -> (i32, i32) {
    %c0_i32 = arith.constant 0 : i32
    %c0_i32_0 = arith.constant 0 : i32
    %c0_i32_1 = arith.constant 0 : i32
    return %c0_i32, %c0_i32_0 : i32, i32
  }
  func.func @transform_15(%arg0: i32) -> (i32, i32, i32) {
    %c0_i32 = arith.constant 0 : i32
    %c0_i32_0 = arith.constant 0 : i32
    %c0_i32_1 = arith.constant 0 : i32
    return %arg0, %c0_i32, %c0_i32_0 : i32, i32, i32
  }
}

</mosaic_0001>

<bundles_post_ra>
// kernel: tpu_custom_call.1
= control target key start
LH: loop header
LB: loop body
LE: loop exit
PB: predicated region body
PF: predicated region fallthrough
CT: control target
= control target key end

     0   :  { %20 = vsyncpa [#allocation6], 0  ;;  %s2418_s0 = inlined_call_operand.hbm [shape: f32[2,4,16], index: 0, kind: input, shape index: {}]   ;;  %s2419_s1 = inlined_call_operand.hbm [shape: f32[1,8], index: 1, kind: input, shape index: {}]   ;;  %s2420_s2 = inlined_call_operand.hbm [shape: f32[1,8], index: 2, kind: input, shape index: {}]   ;;  %s2421_s3 = inlined_call_operand.hbm [shape: f32[3,8,8], index: 3, kind: input, shape index: {}]   ;;  %s2422_s4 = inlined_call_operand.hbm [shape: f32[1,8], index: 4, kind: input, shape index: {}]   ;;  %s2423_s5 = inlined_call_operand.hbm [shape: f32[1,8], index: 5, kind: input, shape index: {}]   ;;  %s2424_s6 = inlined_call_operand.hbm [shape: f32[1,8], index: 6, kind: input, shape index: {}]   ;;  %s2425_s7 = inlined_call_operand.hbm [shape: f32[3,8,8], index: 7, kind: input, shape index: {}]   ;;  %s2426_s8 = inlined_call_operand.hbm [shape: f32[1,8], index: 8, kind: input, shape index: {}]   ;;  %s2427_s9 = inlined_call_operand.vmem [shape: f32[8,8], index: 9, kind: input, shape index: {}]   ;;  %s2428_s10 = inlined_call_operand.vmem [shape: f32[1,8], index: 10, kind: input, shape index: {}]   ;;  %s2429_s11 = inlined_call_operand.vmem [shape: f32[1,8], index: 11, kind: input, shape index: {}]   ;;  %s2430_s12 = inlined_call_operand.vmem [shape: f32[1,8], index: 12, kind: input, shape index: {}]   ;;  %s2431_s13 = inlined_call_operand.vmem [shape: f32[8,8], index: 13, kind: input, shape index: {}]   ;;  %s2432_s14 = inlined_call_operand.vmem [shape: f32[1,8], index: 14, kind: input, shape index: {}]   ;;  %s2433_s15 = inlined_call_operand.hbm [shape: f32[2,8,8], index: 15, kind: output, shape index: {}]  }
   0x1   :  { %21 = vsyncpa [#allocation9], 0 }
   0x2   :  { %22 = vsyncpa [#allocation12], 0 }
   0x3   :  { %23 = vsyncpa [#allocation15], 0 }
   0x4   :  { %24 = vsyncpa [#allocation18], 0 }
   0x5   :  { %25 = vsyncpa [#allocation7], 0  ;;  %s2102_s18 = smov [#allocation8]   ;;  %s2103_s20 = smov [#allocation11]  }
   0x6   :  { %s44_s19 = sshll.u32 %s2102_s18, 4  ;;  %s63_s21 = sshll.u32 %s2103_s20, 4  ;;  %s45_s19 = int_to_ptr.vmem [resolvable:$true] %s44_s19  ;;  %s64_s21 = int_to_ptr.vmem [resolvable:$true] %s63_s21 }
   0x7   :  { %s1898_s22 = scalar_lea.vmem %s45_s19, 16  ;;  %s1902_s23 = scalar_lea.vmem %s45_s19, 32 }
   0x8   :  { %p1899_p0 = scmp.ne.s32.totalorder %s45_s19, %s1898_s22  ;;  %p1903_p1 = scmp.lt.s32.totalorder %s45_s19, %s45_s19 }
   0x9   :  { %p1904_p2 = scmp.lt.s32.totalorder %s1902_s23, %s1898_s22 }
   0xb   :  { %p1905_p3 = por %p1904_p2, %p1903_p1 }
   0xd   :  { %p1906_p4 = pnand %p1905_p3, %p1899_p0 }
   0xf   :  { %1909 = shalt.err (!%p1906_p4)
}
  0x10   :  { %47 = dma.hbm_to_vmem [thread:$0]  %s2419_s1, 16, %s45_s19, [#allocation9]  }
  0x11   :  { %s1918_s26 = scalar_lea.vmem %s64_s21, 384  ;;  %p1923_p6 = scmp.lt.s32.totalorder %s64_s21, %s64_s21 }
  0x12   :  { %p1919_p5 = scmp.ne.s32.totalorder %s64_s21, %s1918_s26  ;;  %p1924_p7 = scmp.lt.s32.totalorder %s1918_s26, %s1918_s26 }
  0x14   :  { %p1925_p8 = por %p1924_p7, %p1923_p6 }
  0x16   :  { %p1926_p9 = pnand %p1925_p8, %p1919_p5 }
  0x18   :  { %1929 = shalt.err (!%p1926_p9)
}
  0x19   :  { %s2104_s27 = smov 128   ;;  %s2105_s28 = smov 8  }
  0x1a   :  { %69 = dma.hbm_to_vmem [thread:$0]  %s2421_s3, 384, %s64_s21, [#allocation12], %s2104_s27, %s2104_s27, %s2105_s28  }
  0x1b   :  { %s2106_s16 = smov [#allocation14]   ;;  %s2107_s18 = smov [#allocation17]  }
  0x1c   :  { %s86_s17 = sshll.u32 %s2106_s16, 4  ;;  %s105_s1 = sshll.u32 %s2107_s18, 4  ;;  %s87_s17 = int_to_ptr.vmem [resolvable:$true] %s86_s17  ;;  %s106_s1 = int_to_ptr.vmem [resolvable:$true] %s105_s1 }
  0x1d   :  { %s1938_s19 = scalar_lea.vmem %s87_s17, 16  ;;  %s1942_s20 = scalar_lea.vmem %s87_s17, 32 }
  0x1e   :  { %p1939_p10 = scmp.ne.s32.totalorder %s87_s17, %s1938_s19  ;;  %p1943_p11 = scmp.lt.s32.totalorder %s87_s17, %s87_s17 }
  0x1f   :  { %p1944_p12 = scmp.lt.s32.totalorder %s1942_s20, %s1938_s19 }
  0x21   :  { %p1945_p13 = por %p1944_p12, %p1943_p11 }
  0x23   :  { %p1946_p0 = pnand %p1945_p13, %p1939_p10 }
  0x25   :  { %1949 = shalt.err (!%p1946_p0)
}
  0x26   :  { %89 = dma.hbm_to_vmem [thread:$0]  %s2423_s5, 16, %s87_s17, [#allocation15]  }
  0x27   :  { %s1958_s24 = scalar_lea.vmem %s106_s1, 384  ;;  %p1963_p2 = scmp.lt.s32.totalorder %s106_s1, %s106_s1 }
  0x28   :  { %p1959_p1 = scmp.ne.s32.totalorder %s106_s1, %s1958_s24  ;;  %p1964_p3 = scmp.lt.s32.totalorder %s1958_s24, %s1958_s24 }
  0x2a   :  { %p1965_p4 = por %p1964_p3, %p1963_p2 }
  0x2c   :  { %p1966_p5 = pnand %p1965_p4, %p1959_p1 }
  0x2e   :  { %1969 = shalt.err (!%p1966_p5)
}
  0x2f   :  { %111 = dma.hbm_to_vmem [thread:$0]  %s2425_s7, 384, %s106_s1, [#allocation18], %s2104_s27, %s2104_s27, %s2105_s28  }
  0x30   :  { %s2108_s25 = smov [#allocation5]  }
  0x31   :  { %s31_s26 = sshll.u32 %s2108_s25, 4  ;;  %s32_s26 = int_to_ptr.vmem [resolvable:$true] %s31_s26 }
  0x32   :  { %s1978_s29 = scalar_lea.vmem %s32_s26, 128  ;;  %p1983_p7 = scmp.lt.s32.totalorder %s32_s26, %s32_s26 }
  0x33   :  { %p1979_p6 = scmp.ne.s32.totalorder %s32_s26, %s1978_s29  ;;  %p1984_p8 = scmp.lt.s32.totalorder %s1978_s29, %s1978_s29 }
  0x35   :  { %p1985_p9 = por %p1984_p8, %p1983_p7 }
  0x37   :  { %p1986_p10 = pnand %p1985_p9, %p1979_p6 }
  0x39   :  { %1989 = shalt.err (!%p1986_p10)
}
  0x3a   :  { %s2109_s5 = smov 64   ;;  %s2110_s30 = smov 4  }
  0x3b   :  { %37 = dma.hbm_to_vmem [thread:$0]  %s2418_s0, 128, %s32_s26, [#allocation6], %s2109_s5, %s2109_s5, %s2110_s30  }
  0x3c   :  { %s2111_s18 = smov [#allocation10]   ;;  %s2112_s7 = smov [#allocation13]  }
  0x3d   :  { %s54_s19 = sshll.u32 %s2111_s18, 4  ;;  %s76_s1 = sshll.u32 %s2112_s7, 4  ;;  %s55_s19 = int_to_ptr.vmem [resolvable:$true] %s54_s19  ;;  %s77_s1 = int_to_ptr.vmem [resolvable:$true] %s76_s1 }
  0x3e   :  { %s1998_s20 = scalar_lea.vmem %s55_s19, 16  ;;  %s2002_s22 = scalar_lea.vmem %s55_s19, 32 }
  0x3f   :  { %p1999_p11 = scmp.ne.s32.totalorder %s55_s19, %s1998_s20  ;;  %p2003_p12 = scmp.lt.s32.totalorder %s55_s19, %s55_s19 }
  0x40   :  { %p2004_p13 = scmp.lt.s32.totalorder %s2002_s22, %s1998_s20 }
  0x42   :  { %p2005_p0 = por %p2004_p13, %p2003_p12 }
  0x44   :  { %p2006_p1 = pnand %p2005_p0, %p1999_p11 }
  0x46   :  { %2009 = shalt.err (!%p2006_p1)
}
  0x47   :  { %57 = dma.hbm_to_vmem [thread:$0]  %s2420_s2, 16, %s55_s19, [#allocation9]  }
  0x48   :  { %s2018_s3 = scalar_lea.vmem %s77_s1, 16  ;;  %s2022_s0 = scalar_lea.vmem %s77_s1, 32 }
  0x49   :  { %p2019_p2 = scmp.ne.s32.totalorder %s77_s1, %s2018_s3  ;;  %p2023_p3 = scmp.lt.s32.totalorder %s77_s1, %s77_s1 }
  0x4a   :  { %p2024_p4 = scmp.lt.s32.totalorder %s2022_s0, %s2018_s3 }
  0x4c   :  { %p2025_p5 = por %p2024_p4, %p2023_p3 }
  0x4e   :  { %p2026_p6 = pnand %p2025_p5, %p2019_p2 }
  0x50   :  { %2029 = shalt.err (!%p2026_p6)
}
  0x51   :  { %79 = dma.hbm_to_vmem [thread:$0]  %s2422_s4, 16, %s77_s1, [#allocation12]  }
  0x52   :  { %s2113_s26 = smov [#allocation16]   ;;  %s2114_s5 = smov [#allocation19]  }
  0x53   :  { %s96_s29 = sshll.u32 %s2113_s26, 4  ;;  %s118_s30 = sshll.u32 %s2114_s5, 4  ;;  %s97_s29 = int_to_ptr.vmem [resolvable:$true] %s96_s29  ;;  %s119_s30 = int_to_ptr.vmem [resolvable:$true] %s118_s30 }
  0x54   :  { %s2038_s16 = scalar_lea.vmem %s97_s29, 16  ;;  %s2042_s2 = scalar_lea.vmem %s97_s29, 32 }
  0x55   :  { %p2039_p7 = scmp.ne.s32.totalorder %s97_s29, %s2038_s16  ;;  %p2043_p8 = scmp.lt.s32.totalorder %s97_s29, %s97_s29 }
  0x56   :  { %p2044_p9 = scmp.lt.s32.totalorder %s2042_s2, %s2038_s16 }
  0x58   :  { %p2045_p10 = por %p2044_p9, %p2043_p8 }
  0x5a   :  { %p2046_p11 = pnand %p2045_p10, %p2039_p7 }
  0x5c   :  { %2049 = shalt.err (!%p2046_p11)
}
  0x5d   :  { %99 = dma.hbm_to_vmem [thread:$0]  %s2424_s6, 16, %s97_s29, [#allocation15]  }
  0x5e   :  { %s2058_s19 = scalar_lea.vmem %s119_s30, 16  ;;  %s2062_s4 = scalar_lea.vmem %s119_s30, 32 }
  0x5f   :  { %p2059_p12 = scmp.ne.s32.totalorder %s119_s30, %s2058_s19  ;;  %p2063_p13 = scmp.lt.s32.totalorder %s119_s30, %s119_s30 }
  0x60   :  { %p2064_p0 = scmp.lt.s32.totalorder %s2062_s4, %s2058_s19 }
  0x62   :  { %p2065_p1 = por %p2064_p0, %p2063_p13 }
  0x64   :  { %p2066_p2 = pnand %p2065_p1, %p2059_p12 }
  0x66   :  { %2069 = shalt.err (!%p2066_p2)
}
  0x67   :  { %121 = dma.hbm_to_vmem [thread:$0]  %s2426_s8, 16, %s119_s30, [#allocation18]  }
  0x68   :  { %2090 = dma.done.wait [#allocation6], 128  }
  0x69   :  { %2091 = vsyncadd [#allocation6], 4294967168 }
  0x6a   :  { %2092 = dma.done.wait [#allocation9], 32  }
  0x6b   :  { %2093 = vsyncadd [#allocation9], 4294967264 }
  0x6c   :  { %2094 = dma.done.wait [#allocation12], 400  }
  0x6d   :  { %2095 = vsyncadd [#allocation12], 4294966896 }
  0x6e   :  { %2096 = dma.done.wait [#allocation15], 32  }
  0x6f   :  { %2097 = vsyncadd [#allocation15], 4294967264 }
  0x70   :  { %2098 = dma.done.wait [#allocation18], 400  }
  0x71   :  { %2099 = vsyncadd [#allocation18], 4294966896  ;;  %vm161_vm0 = vcmask 64544   ;;  %v2115_v0 = vmov 0.0   ;;  %v169_v1 = vld [vmem:[#allocation5] sm:$0xf] }
  0x72   :  { %162 = vst.msk [vmem:[#allocation2] sm:$0xff] %vm161_vm0, %v2115_v0  ;;  %163 = vst.msk [vmem:[#allocation2 + $0x8] sm:$0xff] %vm161_vm0, %v2115_v0  ;;  %1786 = vmatprep.subr.mxu0 %v2115_v0  ;;  %1791 = vmatprep.subr.mxu1 %v2115_v0  ;;  %v2235_v2 = vld [vmem:[#allocation11 + $0x8] sm:$0xff]  ;;  %v2237_v3 = vld [vmem:[#allocation11] sm:$0xff]  ;;  %vm2116_vm1 = vmmov 0   ;;  %vm164_vm2 = vcmask 57344  }
  0x73   :  { %170 = vxpose.xlu0.b32.start.end [1/1] (short) (narrow) %v169_v1, 16  ;;  %1787 = vmatpush3.msra.mxu0 %v2235_v2  ;;  %165 = vst.msk [vmem:[#allocation3] sm:$0x1] %vm164_vm2, %v2115_v0  ;;  %167 = vst.msk [vmem:[#allocation4] sm:$0x1] %vm164_vm2, %v2115_v0  ;;  %vm202_vm3 = vcmask 31744  }
  0x74   :  { %1788 = vmatprep.mubr.msk.f32.mxu0 %vm2116_vm1, %v2115_v0  ;;  %1792 = vmatpush3.msra.mxu1 %v2237_v3  ;;  %168 = vst.msk [vmem:[#allocation4 + $0x9] sm:$0x1] %vm164_vm2, %v2115_v0  ;;  %v2252_v6 = vld [vmem:[#allocation8] ss:$0 sm:$0xff]  ;;  %v2254_v7 = vld [vmem:[#allocation10] ss:$0 sm:$0xff] }
  0x75   :  { %1793 = vmatprep.mubr.msk.f32.mxu1 %vm2116_vm1, %v2115_v0  ;;  %1796 = vmatprep.subr.mxu0 %v2115_v0  ;;  %vm227_vm4 = vcmask 64512   ;;  %v2262_v16 = vld [vmem:[#allocation11 + $0x10] sm:$0xff]  ;;  %v2275_v20 = vld [vmem:[#allocation17 + $0x8] sm:$0xff]  ;;  %v2277_v21 = vld [vmem:[#allocation17] sm:$0xff] }
  0x76   :  { %1801 = vmatprep.subr.mxu1 %v2115_v0  ;;  %v2283_v28 = vld [vmem:[#allocation13] ss:$0 sm:$0xff]  ;;  %v2285_v30 = vld [vmem:[#allocation14] ss:$0 sm:$0xff]  ;;  %v2288_v33 = vld [vmem:[#allocation16] ss:$0 sm:$0xff] }
  0x77   :  { %v2293_v37 = vld [vmem:[#allocation17 + $0x10] sm:$0xff]  ;;  %v2309_v41 = vld [vmem:[%s2427_s9] sm:$0xff]  ;;  %v941_v42 = vld [vmem:[#allocation5 + $0x4] sm:$0xf] }
  0x78   :  { %942 = vxpose.xlu0.b32.start.end [1/1] (short) (narrow) %v941_v42, 16  ;;  %v2313_v49 = vld [vmem:[#allocation19] ss:$0 sm:$0xff] }
  0xef   :  { %v186_v4 = vpop.trf.xlu0 }
  0xf0   :  { %203 = vst.msk [vmem:[#allocation2] sm:$0xff] %vm202_vm3, %v186_v4 }
  0xf3   :  { %v187_v5 = vpop.trf.xlu0 }
  0xf4   :  { %204 = vst.msk [vmem:[#allocation2 + $0x8] sm:$0xff] %vm202_vm3, %v187_v5 }
  0xf7   :  { %v205_v8 = vld [vmem:[#allocation2] sm:$0xff]  ;;  %v958_v61 = vpop.trf.xlu0 }
  0xf8   :  { %v214_v9 = vmul.f32 %v2252_v6, %v205_v8 }
  0xfa   :  { %v223_v10 = vadd.f32 %v2254_v7, %v214_v9 }
  0xfb   :  { %v206_v11 = vld [vmem:[#allocation2 + $0x8] sm:$0xff]  ;;  %v959_v1 = vpop.trf.xlu0 }
  0xfc   :  { %v225_v12 = vmax.f32 %v223_v10, 0.0  ;;  %v215_v13 = vmul.f32 %v2252_v6, %v206_v11  ;;  %v2320_v62 = vld [vmem:[#allocation2] ss:$2 sm:$0xff] }
  0xfd   :  { %974 = vst.msk [vmem:[#allocation2] sm:$0xff] %vm202_vm3, %v958_v61  ;;  %975 = vst.msk [vmem:[#allocation2 + $0x8] sm:$0xff] %vm202_vm3, %v959_v1 }
  0xfe   :  { %v224_v14 = vadd.f32 %v2254_v7, %v215_v13  ;;  %228 = vst.msk [vmem:[#allocation3 + $0x1] sm:$0xff] %vm227_vm4, %v225_v12 }
 0x100   :  { %v226_v15 = vmax.f32 %v224_v14, 0.0 }
 0x102   :  { %229 = vst.msk [vmem:[#allocation3 + $0x9] sm:$0xff] %vm227_vm4, %v226_v15 }
 0x104   :  { %v976_v4 = vld [vmem:[#allocation2] sm:$0xff]  ;;  %v977_v9 = vld [vmem:[#allocation2 + $0x8] sm:$0xff] }
 0x105   :  { %v985_v5 = vmul.f32 %v2252_v6, %v976_v4  ;;  %v986_v11 = vmul.f32 %v2252_v6, %v977_v9  ;;  %v811_v6 = vld [vmem:[%s2431_s13] sm:$0xff] }
 0x107   :  { %v994_v8 = vadd.f32 %v2254_v7, %v985_v5 }
 0x109   :  { %v233_v17 = vld [vmem:[#allocation3 + $0x1] ss:$2 sm:$0xff]  ;;  %v230_v18 = vld [vmem:[#allocation3] ss:$2 sm:$0xff]  ;;  %v996_v10 = vmax.f32 %v994_v8, 0.0 }
 0x10a   :  { %1789 = vmatmul.mubr.msk.f32.vlgmr.msra.gmra.mxu0 %vm227_vm4, %v233_v17  ;;  %1794 = vmatmul.mubr.msk.f32.vlgmr.msra.gmra.mxu1 %vm227_vm4, %v230_v18  ;;  %v383_v19 = vld [vmem:[#allocation3 + $0x2] ss:$2 sm:$0xff] }
 0x10b   :  { %1797 = vmatpush3.msra.mxu0 %v2262_v16  ;;  %1798 = vmatprep.mubr.msk.f32.mxu0 %vm2116_vm1, %v2115_v0  ;;  %998 = vst.msk [vmem:[#allocation3 + $0x1] sm:$0xff] %vm227_vm4, %v996_v10  ;;  %v808_v18 = vld [vmem:[%s2430_s12] sm:$0x1] }
 0x10c   :  { %1806 = vmatprep.subr.mxu0 %v2115_v0  ;;  %1803 = vmatprep.mubr.msk.f32.mxu1 %vm2116_vm1, %v2115_v0 }
 0x10d   :  { %1802 = vmatpush3.msra.mxu1 %v2275_v20 }
 0x10e   :  { %1799 = vmatmul.mubr.msk.f32.vlgmr.msra.gmra.mxu0 %vm227_vm4, %v383_v19  ;;  %1811 = vmatprep.subr.mxu1 %v2115_v0 }
 0x10f   :  { %1808 = vmatprep.mubr.msk.f32.mxu0 %vm2116_vm1, %v2115_v0  ;;  %1807 = vmatpush3.msra.mxu0 %v2277_v21 }
 0x110   :  { %1816 = vmatprep.subr.mxu0 %v2115_v0 }
 0x1ca   :  { %v305_v22 = vpop.f32.mrf.mxu0  ;;  %v378_v23 = vpop.f32.mrf.mxu1 }
 0x1cb   :  { %v379_v26 = vadd.f32 %v378_v23, %v305_v22 }
 0x1cc   :  { %v1790_v24 = vpop.f32.mrf.mxu0  ;;  %v1795_v25 = vpop.f32.mrf.mxu1 }
 0x1ce   :  { %v455_v27 = vpop.f32.mrf.mxu0 }
 0x1cf   :  { %v459_v29 = vadd.f32 %v455_v27, %v379_v26 }
 0x1d0   :  { %v1800_v31 = vpop.f32.mrf.mxu0 }
 0x1d1   :  { %v467_v32 = vadd.f32 %v2283_v28, %v459_v29 }
 0x1d3   :  { %v475_v34 = vmul.f32 %v2285_v30, %v467_v32 }
 0x1d5   :  { %v483_v35 = vadd.f32 %v2288_v33, %v475_v34 }
 0x1d7   :  { %v484_v36 = vmax.f32 %v483_v35, 0.0 }
 0x1d9   :  { %485 = vst.msk [vmem:[#allocation4 + $0x1] sm:$0xff] %vm227_vm4, %v484_v36 }
 0x1e0   :  { %v488_v38 = vld [vmem:[#allocation4 + $0x1] sm:$0xff] }
 0x1e1   :  { %v486_v39 = vld [vmem:[#allocation4] sm:$0xff]  ;;  %1804 = vmatmul.mubr.msk.f32.vlgmr.msra.gmra.mxu1 %vm227_vm4, %v488_v38 }
 0x1e2   :  { %1809 = vmatmul.mubr.msk.f32.vlgmr.msra.gmra.mxu0 %vm227_vm4, %v486_v39  ;;  %1812 = vmatpush3.msra.mxu1 %v2293_v37  ;;  %v637_v40 = vld [vmem:[#allocation4 + $0x2] sm:$0xff] }
 0x1e3   :  { %1813 = vmatprep.mubr.msk.f32.mxu1 %vm2116_vm1, %v2115_v0  ;;  %1818 = vmatprep.mubr.msk.f32.mxu0 %vm2116_vm1, %v2115_v0 }
 0x1e4   :  { %1821 = vmatprep.subr.mxu1 %v2115_v0  ;;  %1817 = vmatpush3.msra.mxu0 %v2309_v41 }
 0x1e5   :  { %1814 = vmatmul.mubr.msk.f32.vlgmr.msra.gmra.mxu1 %vm227_vm4, %v637_v40  ;;  %1826 = vmatprep.subr.mxu0 %v2115_v0 }
 0x1e6   :  { %1823 = vmatprep.mubr.msk.f32.mxu1 %vm2116_vm1, %v2115_v0  ;;  %1822 = vmatpush3.msra.mxu1 %v811_v6 }
 0x1e7   :  { %1831 = vmatprep.subr.mxu1 %v2115_v0 }
 0x2a1   :  { %v560_v43 = vpop.f32.mrf.mxu1 }
 0x2a2   :  { %v633_v44 = vpop.f32.mrf.mxu0 }
 0x2a3   :  { %v1805_v45 = vpop.f32.mrf.mxu1  ;;  %v634_v47 = vadd.f32 %v633_v44, %v560_v43 }
 0x2a4   :  { %v1810_v46 = vpop.f32.mrf.mxu0 }
 0x2a5   :  { %v709_v48 = vpop.f32.mrf.mxu1 }
 0x2a6   :  { %v713_v50 = vadd.f32 %v709_v48, %v634_v47 }
 0x2a7   :  { %v1815_v51 = vpop.f32.mrf.mxu1 }
 0x2a8   :  { %v2316_v52 = vadd.f32 %v2313_v49, %v713_v50 }
 0x2aa   :  { %v722_v53 = vand.u32 2147483647, %v2316_v52 }
 0x2ac   :  { %v723_v54 = vsel %vm227_vm4, %v722_v53, 0.0 }
 0x2ad   :  { %v724_v55 = vrot.slane %v723_v54, 4 }
 0x2af   :  { %v725_v56 = vadd.f32 %v724_v55, %v723_v54 }
 0x2b1   :  { %v726_v57 = vrot.slane %v725_v56, 2 }
 0x2b3   :  { %v727_v58 = vadd.f32 %v726_v57, %v725_v56 }
 0x2b5   :  { %v728_v59 = vrot.slane %v727_v58, 1 }
 0x2b7   :  { %v729_v60 = vadd.f32 %v728_v59, %v727_v58 }
 0x2b9   :  { %v2322_v63 = vmul.f32 0.125, %v729_v60 }
 0x2bb   :  { %1819 = vmatmul.mubr.msk.f32.vlgmr.msra.gmra.mxu0 %vm227_vm4, %v2322_v63 }
 0x2bc   :  { %1827 = vmatpush3.msra.mxu0 %v2235_v2  ;;  %1828 = vmatprep.mubr.msk.f32.mxu0 %vm2116_vm1, %v2115_v0  ;;  %v995_v2 = vadd.f32 %v2254_v7, %v986_v11  ;;  %v732_v7 = vld [vmem:[%s2428_s10] sm:$0x1] }
 0x2bd   :  { %1836 = vmatprep.subr.mxu0 %v2115_v0 }
 0x2be   :  { %v997_v12 = vmax.f32 %v995_v2, 0.0 }
 0x2c0   :  { %999 = vst.msk [vmem:[#allocation3 + $0x9] sm:$0xff] %vm227_vm4, %v997_v12 }
 0x2c7   :  { %v1002_v13 = vld [vmem:[#allocation3 + $0x1] ss:$2 sm:$0xff]  ;;  %v1150_v14 = vld [vmem:[#allocation3 + $0x2] ss:$2 sm:$0xff] }
 0x2c8   :  { %1829 = vmatmul.mubr.msk.f32.vlgmr.msra.gmra.mxu0 %vm227_vm4, %v1002_v13  ;;  %v1000_v24 = vld [vmem:[#allocation3] ss:$2 sm:$0xff] }
 0x2c9   :  { %1837 = vmatpush3.msra.mxu0 %v2262_v16  ;;  %1838 = vmatprep.mubr.msk.f32.mxu0 %vm2116_vm1, %v2115_v0  ;;  %v806_v16 = vld [vmem:[%s2429_s11] sm:$0x1] }
 0x2ca   :  { %1846 = vmatprep.subr.mxu0 %v2115_v0 }
 0x2cc   :  { %1839 = vmatmul.mubr.msk.f32.vlgmr.msra.gmra.mxu0 %vm227_vm4, %v1150_v14 }
 0x2cd   :  { %1847 = vmatpush3.msra.mxu0 %v2277_v21  ;;  %1848 = vmatprep.mubr.msk.f32.mxu0 %vm2116_vm1, %v2115_v0 }
 0x2ce   :  { %1856 = vmatprep.subr.mxu0 %v2115_v0 }
 0x37b   :  { %v802_v15 = vpop.f32.mrf.mxu0 }
 0x37c   :  { %v803_v17 = vadd.f32 %v802_v15, %v732_v7  ;;  %v1496_v7 = vld [vmem:[%s2428_s10] sm:$0x1] }
 0x37d   :  { %v1820_v19 = vpop.f32.mrf.mxu0 }
 0x37e   :  { %v807_v21 = vmul.f32 %v806_v16, %v803_v17  ;;  %v1572_v17 = vld [vmem:[%s2430_s12] sm:$0x1] }
 0x380   :  { %v809_v22 = vadd.f32 %v808_v18, %v807_v21 }
 0x382   :  { %v810_v23 = vmax.f32 %v809_v22, 0.0 }
 0x384   :  { %1824 = vmatmul.mubr.msk.f32.vlgmr.msra.gmra.mxu1 %vm227_vm4, %v810_v23 }
 0x385   :  { %1832 = vmatpush3.msra.mxu1 %v2237_v3  ;;  %1833 = vmatprep.mubr.msk.f32.mxu1 %vm2116_vm1, %v2115_v0  ;;  %v812_v3 = vld [vmem:[%s2432_s14] sm:$0x1] }
 0x386   :  { %1841 = vmatprep.subr.mxu1 %v2115_v0 }
 0x388   :  { %1834 = vmatmul.mubr.msk.f32.vlgmr.msra.gmra.mxu1 %vm227_vm4, %v1000_v24  ;;  %v1073_v25 = vpop.f32.mrf.mxu0  ;;  %v1576_v24 = vld [vmem:[%s2432_s14] sm:$0x1] }
 0x389   :  { %1842 = vmatpush3.msra.mxu1 %v2275_v20  ;;  %1843 = vmatprep.mubr.msk.f32.mxu1 %vm2116_vm1, %v2115_v0 }
 0x38a   :  { %1851 = vmatprep.subr.mxu1 %v2115_v0  ;;  %v1830_v26 = vpop.f32.mrf.mxu0 }
 0x38c   :  { %v1221_v27 = vpop.f32.mrf.mxu0 }
 0x38e   :  { %v1840_v29 = vpop.f32.mrf.mxu0 }
 0x444   :  { %v882_v31 = vpop.f32.mrf.mxu1 }
 0x445   :  { %v883_v32 = vadd.f32 %v882_v31, %v812_v3 }
 0x446   :  { %v1825_v34 = vpop.f32.mrf.mxu1 }
 0x447   :  { %v886_v35 = vsub.f32 0.0, %v883_v32 }
 0x448   :  { %v1146_v36 = vpop.f32.mrf.mxu1 }
 0x449   :  { %v887_v38 = vmul.f32 1.442695, %v886_v35  ;;  %v1147_v20 = vadd.f32 %v1146_v36, %v1073_v25 }
 0x44a   :  { %v1835_v39 = vpop.f32.mrf.mxu1 }
 0x44b   :  { %1882 = vpow2.f32 %v887_v38  ;;  %v1225_v40 = vadd.f32 %v1221_v27, %v1147_v20 }
 0x44d   :  { %v1233_v42 = vadd.f32 %v2283_v28, %v1225_v40 }
 0x44f   :  { %v1241_v43 = vmul.f32 %v2285_v30, %v1233_v42  ;;  %v894_v30 = vlaneseq }
 0x451   :  { %v1249_v44 = vadd.f32 %v2288_v33, %v1241_v43  ;;  %v895_v33 = vshrl.u32 %v894_v30, 7  ;;  %v1669_v43 = vld [vmem:[#allocation2] ss:$2 sm:$0xff] }
 0x453   :  { %v1250_v45 = vmax.f32 %v1249_v44, 0.0  ;;  %v896_v54 = vsub.s32 0, %v895_v33 }
 0x455   :  { %1251 = vst.msk [vmem:[#allocation4 + $0x1] sm:$0xff] %vm227_vm4, %v1250_v45 }
 0x458   :  { %v1883_v46 = vpop.eup %1882 }
 0x459   :  { %v889_v47 = vadd.f32 1.0, %v1883_v46 }
 0x45b   :  { %1884 = vrcp.f32 %v889_v47 }
 0x45c   :  { %v1254_v48 = vld [vmem:[#allocation4 + $0x1] sm:$0xff] }
 0x45d   :  { %v1252_v50 = vld [vmem:[#allocation4] sm:$0xff]  ;;  %1844 = vmatmul.mubr.msk.f32.vlgmr.msra.gmra.mxu1 %vm227_vm4, %v1254_v48 }
 0x45e   :  { %1849 = vmatmul.mubr.msk.f32.vlgmr.msra.gmra.mxu0 %vm227_vm4, %v1252_v50  ;;  %1852 = vmatpush3.msra.mxu1 %v2293_v37  ;;  %v1402_v28 = vld [vmem:[#allocation4 + $0x2] sm:$0xff] }
 0x45f   :  { %1853 = vmatprep.mubr.msk.f32.mxu1 %vm2116_vm1, %v2115_v0  ;;  %1857 = vmatpush3.msra.mxu0 %v2309_v41 }
 0x460   :  { %1858 = vmatprep.mubr.msk.f32.mxu0 %vm2116_vm1, %v2115_v0  ;;  %1861 = vmatprep.subr.mxu1 %v2115_v0 }
 0x461   :  { %1854 = vmatmul.mubr.msk.f32.vlgmr.msra.gmra.mxu1 %vm227_vm4, %v1402_v28 }
 0x462   :  { %1862 = vmatpush3.msra.mxu1 %v811_v6  ;;  %1863 = vmatprep.mubr.msk.f32.mxu1 %vm2116_vm1, %v2115_v0 }
 0x468   :  { %v1885_v37 = vpop.eup %1884 }
 0x469   :  { %v892_v51 = vmul.f32 %v1885_v37, %v2322_v63 }
 0x46b   :  { %v893_v53 = vsub.f32 0.0, %v892_v51  ;;  %v902_v56 = vrot.slane %v892_v51, %v896_v54 }
 0x46d   :  { %v897_v41 = vrot.slane %v893_v53, %v896_v54 }
 0x46f   :  { %v898_v55 = vmax.f32 %v897_v41, %v2316_v52 }
 0x471   :  { %v903_v57 = vmin.f32 %v902_v56, %v898_v55 }
 0x473   :  { %v904_v58 = vsub.f32 %v2316_v52, %v903_v57 }
 0x475   :  { %v906_v59 = vadd.f32 %v2320_v62, %v904_v58 }
 0x477   :  { %907 = vxpose.xlu1.b32.start.end [1/1] (short) (narrow) %v906_v59, 8 }
 0x4f3   :  { %v923_v23 = vpop.trf.xlu1 }
 0x4f4   :  { %939 = vst.msk [vmem:[#allocation20] sm:$0xff] %vm227_vm4, %v923_v23 }
 0x51d   :  { %v1325_v60 = vpop.f32.mrf.mxu1 }
 0x51e   :  { %v1398_v61 = vpop.f32.mrf.mxu0 }
 0x51f   :  { %v1845_v0 = vpop.f32.mrf.mxu1  ;;  %v1399_v4 = vadd.f32 %v1398_v61, %v1325_v60 }
 0x520   :  { %v1850_v1 = vpop.f32.mrf.mxu0 }
 0x521   :  { %v1473_v5 = vpop.f32.mrf.mxu1 }
 0x522   :  { %v1477_v8 = vadd.f32 %v1473_v5, %v1399_v4 }
 0x523   :  { %v1855_v63 = vpop.f32.mrf.mxu1 }
 0x524   :  { %v1485_v9 = vadd.f32 %v2313_v49, %v1477_v8  ;;  %v1570_v49 = vld [vmem:[%s2429_s11] sm:$0x1]  ;;  %s2117_s11 = smov [#allocation20]  }
 0x525   :  { %s1710_s12 = sshll.u32 %s2117_s11, 4  ;;  %s1711_s12 = int_to_ptr.vmem [resolvable:$true] %s1710_s12 }
 0x526   :  { %v1486_v10 = vand.u32 2147483647, %v1485_v9  ;;  %s2070_s14 = scalar_lea.vmem %s1711_s12, 256  ;;  %p2075_p4 = scmp.lt.s32.totalorder %s1711_s12, %s1711_s12 }
 0x527   :  { %p2071_p3 = scmp.ne.s32.totalorder %s1711_s12, %s2070_s14  ;;  %p2076_p5 = scmp.lt.s32.totalorder %s2070_s14, %s2070_s14 }
 0x528   :  { %v1487_v11 = vsel %vm227_vm4, %v1486_v10, 0.0 }
 0x529   :  { %v1488_v2 = vrot.slane %v1487_v11, 4  ;;  %p2077_p6 = por %p2076_p5, %p2075_p4 }
 0x52b   :  { %v1489_v12 = vadd.f32 %v1488_v2, %v1487_v11  ;;  %p2078_p7 = pnand %p2077_p6, %p2071_p3 }
 0x52d   :  { %v1490_v13 = vrot.slane %v1489_v12, 2 }
 0x52f   :  { %v1491_v52 = vadd.f32 %v1490_v13, %v1489_v12 }
 0x531   :  { %v1492_v14 = vrot.slane %v1491_v52, 1 }
 0x533   :  { %v1493_v62 = vadd.f32 %v1492_v14, %v1491_v52 }
 0x535   :  { %v1494_v6 = vmul.f32 0.125, %v1493_v62 }
 0x537   :  { %1859 = vmatmul.mubr.msk.f32.vlgmr.msra.gmra.mxu0 %vm227_vm4, %v1494_v6 }
 0x5f7   :  { %v1566_v15 = vpop.f32.mrf.mxu0 }
 0x5f8   :  { %v1567_v16 = vadd.f32 %v1566_v15, %v1496_v7 }
 0x5f9   :  { %v1860_v18 = vpop.f32.mrf.mxu0 }
 0x5fa   :  { %v1571_v19 = vmul.f32 %v1570_v49, %v1567_v16 }
 0x5fc   :  { %v1573_v21 = vadd.f32 %v1572_v17, %v1571_v19 }
 0x5fe   :  { %v1574_v22 = vmax.f32 %v1573_v21, 0.0 }
 0x600   :  { %1864 = vmatmul.mubr.msk.f32.vlgmr.msra.gmra.mxu1 %vm227_vm4, %v1574_v22 }
 0x6c0   :  { %v1646_v25 = vpop.f32.mrf.mxu1 }
 0x6c1   :  { %v1647_v26 = vadd.f32 %v1646_v25, %v1576_v24 }
 0x6c2   :  { %v1865_v27 = vpop.f32.mrf.mxu1 }
 0x6c3   :  { %v1650_v29 = vsub.f32 0.0, %v1647_v26 }
 0x6c5   :  { %v1651_v3 = vmul.f32 1.442695, %v1650_v29 }
 0x6c7   :  { %1886 = vpow2.f32 %v1651_v3 }
 0x6d4   :  { %v1887_v31 = vpop.eup %1886 }
 0x6d5   :  { %v1653_v32 = vadd.f32 1.0, %v1887_v31 }
 0x6d7   :  { %1888 = vrcp.f32 %v1653_v32 }
 0x6e4   :  { %v1889_v34 = vpop.eup %1888 }
 0x6e5   :  { %v1656_v35 = vmul.f32 %v1889_v34, %v1494_v6 }
 0x6e7   :  { %v1657_v36 = vsub.f32 0.0, %v1656_v35  ;;  %v1666_v39 = vrot.slane %v1656_v35, %v896_v54 }
 0x6e9   :  { %v1661_v38 = vrot.slane %v1657_v36, %v896_v54 }
 0x6eb   :  { %v1662_v20 = vmax.f32 %v1661_v38, %v1485_v9 }
 0x6ed   :  { %v1667_v40 = vmin.f32 %v1666_v39, %v1662_v20 }
 0x6ef   :  { %v1668_v42 = vsub.f32 %v1485_v9, %v1667_v40 }
 0x6f1   :  { %v1670_v44 = vadd.f32 %v1669_v43, %v1668_v42 }
 0x6f3   :  { %1671 = vxpose.xlu1.b32.start.end [1/1] (short) (narrow) %v1670_v44, 8 }
 0x76f   :  { %v1687_v45 = vpop.trf.xlu1 }
 0x770   :  { %1704 = vst.msk [vmem:[#allocation20 + $0x8] sm:$0xff] %vm227_vm4, %v1687_v45 }
 0x771   :  { %2081 = shalt.err (!%p2078_p7)
}
 0x772   :  { %1716 = dma.vmem_to_hbm [thread:$0]  %s1711_s12, 256, %s2433_s15, [#allocation7], %s2104_s27, %s2104_s27, %s2105_s28  }
 0x773   :  { %2100 = dma.done.wait [#allocation7], 256  }
 0x774   :  { %2101 = vsyncadd [#allocation7], 4294967040 }
 0x775   :  { %1720 = vsyncpa [#allocation6], 1 }
 0x776   :  { %1721 = vsyncpa [#allocation9], 1 }
 0x777   :  { %1722 = vsyncpa [#allocation12], 1 }
 0x778   :  { %1723 = vsyncpa [#allocation15], 1 }
 0x779   :  { %1724 = vsyncpa [#allocation18], 1 }
 0x77a   :  { %1725 = vsyncpa [#allocation7], 1 }

</bundles_post_ra>
